<compile_context>
chip_gen: v7x
topology: tpu7x:2x2x1
jax: 0.10.0
libtpu: 0.0.40
codegen_flags: <defaults>
</compile_context>

<pallas_src>
import functools

import jax
import jax.numpy as jnp
from jax.experimental import pallas as pl
from jax.experimental.pallas import tpu as pltpu


# Row indices into the packed bias array (each row zero-padded to 128 lanes).
_B_C1V, _B_C1G, _B_C2V, _B_C2G, _B_C3V, _B_C3G = 0, 1, 2, 3, 4, 5
_B_L1, _B_L2, _B_T1, _B_T2, _B_T3, _B_OUT, _B_DL = 6, 7, 8, 9, 10, 11, 12


# -------------------------------------------------------------------------------------------
# Fused forward kernel (one batch *block* per program).
# -------------------------------------------------------------------------------------------
def make_fused_kernel(*, k, F, L, L0, Vp):
    C3 = 3 * F
    pad_same = k // 2
    pad_full = k - 1

    def conv_sum(x, w, pad, Lout):
        """Tap-sum conv.  x:[BB,Lx,Cin] f32, w:[k,Cin,Cout] bf16 (tap-major, correlation order).
        Zero halo of `pad` rows per batch element; f32 accumulation on the MXU."""
        BB, Lx, Cin = x.shape
        xb = x.astype(jnp.bfloat16)
        halo = jnp.zeros((BB, pad, Cin), jnp.bfloat16)
        xp = jnp.concatenate([halo, xb, halo], axis=1)              # sublane-only concat
        acc = None
        for t in range(k):
            sl = xp[:, t:t + Lout, :].reshape(BB * Lout, Cin)
            y = jnp.dot(sl, w[t], preferred_element_type=jnp.float32)
            acc = y if acc is None else acc + y
        return acc.reshape(BB, Lout, w.shape[-1])

    def kernel(tok_ref, eps_ref, emb_ref, c1w, c2w, c3w, l12w, dlw,
               t1w, t2w, t3w, ow, b_ref, stat_ref, dec_ref):
        BB = tok_ref.shape[0]
        b = b_ref[...]                                              # [12+L0, 128] f32, tiny

        # ---- Embedding lookup as a one-hot matmul (gather-free, MXU). ----
        # TODO(synk): token ids >= padded vocab give a zero embedding instead of the index
        # error nn.Embedding would raise; inputs are assumed in-range.
        tok = tok_ref[...].reshape(BB * L, 1)
        onehot = (tok == jax.lax.broadcasted_iota(jnp.int32, (BB * L, Vp), 1)
                  ).astype(jnp.float32)
        x = jnp.dot(onehot, emb_ref[...], preferred_element_type=jnp.float32)
        x = x.reshape(BB, L, emb_ref.shape[1])                      # [BB, L, E]

        # ---- Gated-CNN encoder (Dropout layers are eval-mode identity). ----
        def glu_conv(xin, w_all, bv, bg, cout):
            val = conv_sum(xin, w_all[0], pad_same, xin.shape[1]) + b[bv, :cout]
            gate = conv_sum(xin, w_all[1], pad_same, xin.shape[1]) + b[bg, :cout]
            return val * jax.nn.sigmoid(gate)

        x = glu_conv(x, c1w[...], _B_C1V, _B_C1G, F)                # [BB, L, F]
        x = glu_conv(x, c2w[...], _B_C2V, _B_C2G, 2 * F)            # [BB, L, 2F]
        x = glu_conv(x, c3w[...], _B_C3V, _B_C3G, C3)               # [BB, L, 3F]

        # ---- VAE head: AdaptiveAvgPool1d(1) -> Linear+ReLU heads -> reparametrize. ----
        l12 = l12w[...]
        pooled = jnp.mean(x, axis=1).astype(jnp.bfloat16)           # [BB, 3F]
        mu = jnp.maximum(
            jnp.dot(pooled, l12[0], preferred_element_type=jnp.float32) + b[_B_L1, :C3], 0.0)
        lv = jnp.maximum(
            jnp.dot(pooled, l12[1], preferred_element_type=jnp.float32) + b[_B_L2, :C3], 0.0)
        z = eps_ref[:, 0, :] * jnp.exp(0.5 * lv) + mu               # eps ~ N(0, std=0.1)
        stat_ref[...] = jnp.stack([z, mu, lv], axis=1)              # single merged writeback

        # ---- Decoder: Linear+ReLU (position-major, 128-lane padded), 3x deconv+ReLU, Linear. --
        d = jnp.dot(z.astype(jnp.bfloat16), dlw[...], preferred_element_type=jnp.float32)
        d = jnp.maximum(d.reshape(BB, L0, 128) + b[_B_DL:_B_DL + L0, :], 0.0)   # [BB, L0, 128]

        def deconv_relu(xin, w, bi, cout):
            y = conv_sum(xin, w, pad_full, xin.shape[1] + k - 1)
            return jnp.maximum(y + b[bi, :cout], 0.0)

        d = deconv_relu(d, t1w[...], _B_T1, 2 * F)                  # [BB, L0+k-1, 2F]
        d = deconv_relu(d, t2w[...], _B_T2, F)                      # [BB, L0+2(k-1), F]
        d = deconv_relu(d, t3w[...], _B_T3, 128)                    # [BB, L, 128]

        y = jnp.dot(d.reshape(BB * L, 128).astype(jnp.bfloat16), ow[...],
                    preferred_element_type=jnp.float32) + b[_B_OUT, :]
        dec_ref[...] = y.reshape(BB, L, 128)                        # lane-dense (128) writeback

    return kernel


# -------------------------------------------------------------------------------------------
# Host-side parameter construction (raw PyTorch layouts) + kernel-layout preparation.
# -------------------------------------------------------------------------------------------
def init_params(key, *, vocab, embed_dim, F, k, max_len, size):
    ks = jax.random.split(key, 20)
    g = lambda i, shape, s=0.1: s * jax.random.normal(ks[i], shape, jnp.float32)
    L0 = max_len - 3 * (k - 1)
    return {
        "emb": g(0, (vocab, embed_dim)),
        # Conv1d weights: [out_c, in_c, k]
        "c1_w": g(1, (2 * F, embed_dim, k)), "c1_b": g(2, (2 * F,)),
        "c2_w": g(3, (4 * F, F, k)),         "c2_b": g(4, (4 * F,)),
        "c3_w": g(5, (6 * F, 2 * F, k)),     "c3_b": g(6, (6 * F,)),
        # Linear weights: [out, in]
        "l1_w": g(7, (3 * F, 3 * F)),  "l1_b": g(8, (3 * F,)),
        "l2_w": g(9, (3 * F, 3 * F)),  "l2_b": g(10, (3 * F,)),
        "dl_w": g(11, (3 * F * L0, 3 * F)), "dl_b": g(12, (3 * F * L0,)),
        # ConvTranspose1d weights: [in_c, out_c, k]
        "t1_w": g(13, (3 * F, 2 * F, k)), "t1_b": g(14, (2 * F,)),
        "t2_w": g(15, (2 * F, F, k)),     "t2_b": g(16, (F,)),
        "t3_w": g(17, (F, 128, k)),       "t3_b": g(18, (128,)),
        "out_w": g(19, (size, 128)),      "out_b": jnp.zeros((size,), jnp.float32),
    }


def prepare_params(raw, *, F, k, max_len):
    """One-time host-side layout plumbing: tap-major bf16 matmul weights, packed biases,
    lane-dense paddings — so the kernel does no relayout work."""
    L0 = max_len - 3 * (k - 1)
    C3 = 3 * F
    wdt = jnp.bfloat16

    def conv_taps(w_pt):          # Conv1d [oc, ic, k] -> tap-major [k, ic, oc]
        return jnp.transpose(w_pt, (2, 1, 0))

    def convT_taps(w_pt):         # ConvTranspose1d [ic, oc, k] -> flipped taps [k, ic, oc]
        return jnp.transpose(jnp.flip(w_pt, axis=2), (2, 0, 1))

    def glu_pack(w_pt):           # -> [2 (value/gate), k, ic, oc_half]
        h = w_pt.shape[0] // 2
        return jnp.stack([conv_taps(w_pt[:h]), conv_taps(w_pt[h:])]).astype(wdt)

    def pad_lanes(a, to=128):     # zero-pad last dim up to `to`
        return jnp.pad(a, [(0, 0)] * (a.ndim - 1) + [(0, to - a.shape[-1])])

    # Embedding: pad vocab rows to a sublane multiple (contraction dim of the one-hot matmul).
    V = raw["emb"].shape[0]
    Vp = ((V + 7) // 8) * 8
    emb = jnp.pad(raw["emb"], ((0, Vp - V), (0, 0))).astype(jnp.float32)

    # Decoder Linear: fold view(-1, 3F, L0)+permute into the weight AND pad each position's
    # C3 output block to 128 lanes so the in-kernel [BB, L0*128] -> [BB, L0, 128] reshape is a
    # tile-aligned relayout (no unaligned lane slices).
    wd = raw["dl_w"].T.reshape(C3, C3, L0).transpose(0, 2, 1)        # [C3_in, L0, C3_out]
    dl = pad_lanes(wd).reshape(C3, L0 * 128).astype(wdt)
    dlb = pad_lanes(raw["dl_b"].reshape(C3, L0).T)                   # [L0, 128]

    # t1 consumes the 128-lane-padded decoder activations -> zero rows for padded channels.
    t1 = jnp.pad(convT_taps(raw["t1_w"]), ((0, 0), (0, 128 - C3), (0, 0))).astype(wdt)

    # Output Linear: pad out-features 'size' -> 128 so the decoded writeback is lane-dense.
    ow = pad_lanes(raw["out_w"].T).astype(wdt)                       # [128, 128]

    # All biases packed into one [12 + L0, 128] f32 array (rows indexed by _B_* constants).
    def brow(v):
        return jnp.pad(v, (0, 128 - v.shape[0]))
    bias_rows = jnp.stack([
        brow(raw["c1_b"][:F]),       brow(raw["c1_b"][F:]),
        brow(raw["c2_b"][:2 * F]),   brow(raw["c2_b"][2 * F:]),
        brow(raw["c3_b"][:C3]),      brow(raw["c3_b"][C3:]),
        brow(raw["l1_b"]),           brow(raw["l2_b"]),
        brow(raw["t1_b"]),           brow(raw["t2_b"]),
        brow(raw["t3_b"]),           brow(raw["out_b"]),
    ])
    biases = jnp.concatenate([bias_rows, dlb], axis=0).astype(jnp.float32)

    return {
        "emb": emb,
        "c1w": glu_pack(raw["c1_w"]),
        "c2w": glu_pack(raw["c2_w"]),
        "c3w": glu_pack(raw["c3_w"]),
        "l12w": jnp.stack([raw["l1_w"].T, raw["l2_w"].T]).astype(wdt),
        "dlw": dl,
        "t1w": t1,
        "t2w": convT_taps(raw["t2_w"]).astype(wdt),
        "t3w": convT_taps(raw["t3_w"]).astype(wdt),
        "ow": ow,
        "biases": biases,
    }


def _pick_num_blocks(B):
    """v7x has 2 TensorCores/chip -> split the batch into 2 'parallel' grid blocks there; on
    single-TC chips (v5e/v6e) extra grid steps are pure per-step overhead, so use 1."""
    try:
        kind = jax.devices()[0].device_kind.lower()
    except Exception:
        kind = ""
    if "v7" in kind and B % 2 == 0:
        return 2
    return 1


# -------------------------------------------------------------------------------------------
# Forward pass: a single pallas_call.
# -------------------------------------------------------------------------------------------
def net_forward(kp, tokens, eps, *, F, k, max_len, size, num_blocks=None):
    B, L = tokens.shape
    L0 = max_len - 3 * (k - 1)
    C3 = 3 * F
    Vp = kp["emb"].shape[0]

    G = num_blocks if num_blocks is not None else _pick_num_blocks(B)
    if B % G != 0:
        G = 1
    BB = B // G

    kernel = make_fused_kernel(k=k, F=F, L=L, L0=L0, Vp=Vp)

    weight_order = ("emb", "c1w", "c2w", "c3w", "l12w", "dlw",
                    "t1w", "t2w", "t3w", "ow", "biases")
    weights = [kp[name] for name in weight_order]

    def batched(*tail):   # one batch block per grid step (trailing dims full)
        return pl.BlockSpec((BB,) + tail, lambda g, _t=len(tail): (g,) + (0,) * _t)

    def resident(arr):    # full array, constant block index -> VMEM-resident across grid
        return pl.BlockSpec(arr.shape, lambda g, _n=arr.ndim: (0,) * _n)

    in_specs = [batched(L, 1), batched(1, C3)] + [resident(w) for w in weights]
    out_specs = (batched(3, C3), batched(L, 128))
    out_shape = (jax.ShapeDtypeStruct((B, 3, C3), jnp.float32),      # z / mu / logvar merged
                 jax.ShapeDtypeStruct((B, L, 128), jnp.float32))     # decoded (padded lanes)

    stat, dec = pl.pallas_call(
        kernel,
        out_shape=out_shape,
        grid=(G,),
        in_specs=in_specs,
        out_specs=out_specs,
        compiler_params=pltpu.CompilerParams(dimension_semantics=("parallel",)),
    )(tokens.reshape(B, L, 1).astype(jnp.int32), eps.reshape(B, 1, C3), *weights)

    z, mu, lv = stat[:, 0, :], stat[:, 1, :], stat[:, 2, :]
    return z, dec[:, :, :size], tokens, mu, lv


# -------------------------------------------------------------------------------------------
# Pure-JAX reference (raw PyTorch-layout params) for correctness checking.
# -------------------------------------------------------------------------------------------
def reference_forward(raw, tokens, eps, *, F, k, max_len, size):
    B, L = tokens.shape
    x = raw["emb"][tokens]                                             # [B, L, E]

    def conv_same(x, w_pt, bias):                                      # w_pt: [oc, ic, k]
        pad = k // 2
        Lout = x.shape[1]
        xp = jnp.pad(x, ((0, 0), (pad, pad), (0, 0)))
        acc = jnp.zeros((x.shape[0], Lout, w_pt.shape[0]), jnp.float32) + bias
        for t in range(k):
            acc = acc + jnp.einsum("blc,oc->blo", xp[:, t:t + Lout, :], w_pt[:, :, t])
        return acc

    def glu(a):
        h = a.shape[-1] // 2
        return a[..., :h] * jax.nn.sigmoid(a[..., h:])

    x = glu(conv_same(x, raw["c1_w"], raw["c1_b"]))
    x = glu(conv_same(x, raw["c2_w"], raw["c2_b"]))
    x = glu(conv_same(x, raw["c3_w"], raw["c3_b"]))

    pooled = jnp.mean(x, axis=1)
    mu = jax.nn.relu(pooled @ raw["l1_w"].T + raw["l1_b"])
    lv = jax.nn.relu(pooled @ raw["l2_w"].T + raw["l2_b"])
    z = eps * jnp.exp(0.5 * lv) + mu

    L0 = max_len - 3 * (k - 1)
    d = jax.nn.relu(z @ raw["dl_w"].T + raw["dl_b"]).reshape(B, 3 * F, L0)   # [B, C, L0]

    def convT(x_ncl, w_pt, bias):                                      # w_pt: [ic, oc, k]
        Bc, C, Lin = x_ncl.shape
        Lout = Lin + k - 1
        y = jnp.zeros((Bc, w_pt.shape[1], Lout), jnp.float32) + bias[None, :, None]
        for t in range(k):
            y = y.at[:, :, t:t + Lin].add(jnp.einsum("bcl,co->bol", x_ncl, w_pt[:, :, t]))
        return y

    d = jax.nn.relu(convT(d, raw["t1_w"], raw["t1_b"]))
    d = jax.nn.relu(convT(d, raw["t2_w"], raw["t2_b"]))
    d = jax.nn.relu(convT(d, raw["t3_w"], raw["t3_b"]))
    dec = d.transpose(0, 2, 1) @ raw["out_w"].T + raw["out_b"]
    return z, dec, mu, lv


# -------------------------------------------------------------------------------------------
if __name__ == "__main__":
    B = 2
    MAX_SMI_LEN = 16          # FLAGS.max_smi_len
    CHARSMISET_SIZE = 40      # FLAGS.charsmiset_size
    EMBED_DIM = 32
    NUM_FILTERS = 8
    FILTER_LENGTH1 = 3        # odd -> 'same' conv length

    key = jax.random.PRNGKey(0)
    pkey, tkey, ekey = jax.random.split(key, 3)

    raw = init_params(pkey, vocab=CHARSMISET_SIZE + 1, embed_dim=EMBED_DIM,
                      F=NUM_FILTERS, k=FILTER_LENGTH1,
                      max_len=MAX_SMI_LEN, size=CHARSMISET_SIZE)
    kparams = prepare_params(raw, F=NUM_FILTERS, k=FILTER_LENGTH1, max_len=MAX_SMI_LEN)

    tokens = jax.random.randint(tkey, (B, MAX_SMI_LEN), 0, CHARSMISET_SIZE + 1, dtype=jnp.int32)
    # TODO(synk): torch.cuda RNG for the reparametrization eps has no TPU equivalent; drawn
    # here with jax.random (std = 0.1, matching torch .normal_(0, 0.1)) and fed to the kernel.
    eps = 0.1 * jax.random.normal(ekey, (B, 3 * NUM_FILTERS), jnp.float32)

    fwd = jax.jit(functools.partial(net_forward, F=NUM_FILTERS, k=FILTER_LENGTH1,
                                    max_len=MAX_SMI_LEN, size=CHARSMISET_SIZE))
    z, dec, x_init, mu, logvar = jax.block_until_ready(fwd(kparams, tokens, eps))

    assert z.shape == (B, 3 * NUM_FILTERS)
    assert mu.shape == (B, 3 * NUM_FILTERS) and logvar.shape == (B, 3 * NUM_FILTERS)
    assert dec.shape == (B, MAX_SMI_LEN, CHARSMISET_SIZE)
    assert x_init.shape == (B, MAX_SMI_LEN)

    # Numerical check against a pure-JAX f32 reference (raw PyTorch-layout weights).
    # Tolerances loosened to cover bf16 matmul inputs (accumulation stays f32).
    z_r, dec_r, mu_r, lv_r = reference_forward(raw, tokens, eps, F=NUM_FILTERS,
                                               k=FILTER_LENGTH1, max_len=MAX_SMI_LEN,
                                               size=CHARSMISET_SIZE)
    for got, want, name in ((z, z_r, "z"), (dec, dec_r, "dec"),
                            (mu, mu_r, "mu"), (logvar, lv_r, "logvar")):
        assert jnp.allclose(got, want, atol=5e-3, rtol=5e-2), (
            f"mismatch in {name}: max|diff|={float(jnp.max(jnp.abs(got - want)))}")

    print("KERNEL_OK")
</pallas_src>

<mosaic_0001>
module attributes {stable_mosaic.version = 11 : i64} {
  func.func @kernel(%arg0: i32, %arg1: memref<2x16x1xi32, #tpu.memory_space<vmem>>, %arg2: memref<2x1x24xf32, #tpu.memory_space<vmem>>, %arg3: memref<48x32xf32, #tpu.memory_space<vmem>>, %arg4: memref<2x3x32x8xbf16, #tpu.memory_space<vmem>>, %arg5: memref<2x3x8x16xbf16, #tpu.memory_space<vmem>>, %arg6: memref<2x3x16x24xbf16, #tpu.memory_space<vmem>>, %arg7: memref<2x24x24xbf16, #tpu.memory_space<vmem>>, %arg8: memref<24x1280xbf16, #tpu.memory_space<vmem>>, %arg9: memref<3x128x16xbf16, #tpu.memory_space<vmem>>, %arg10: memref<3x16x8xbf16, #tpu.memory_space<vmem>>, %arg11: memref<3x8x128xbf16, #tpu.memory_space<vmem>>, %arg12: memref<128x128xbf16, #tpu.memory_space<vmem>>, %arg13: memref<22x128xf32, #tpu.memory_space<vmem>>, %arg14: memref<2x3x24xf32, #tpu.memory_space<vmem>>, %arg15: memref<2x16x128xf32, #tpu.memory_space<vmem>>) attributes {dimension_semantics = [#tpu.dimension_semantics<parallel>], iteration_bounds = array<i64: 1>, scalar_prefetch = 0 : i64, scratch_operands = 0 : i64, tpu.core_type = #tpu.core_type<tc>, window_params = [{transform_indices = @transform_0, window_bounds = array<i64: 2, 16, 1>}, {transform_indices = @transform_1, window_bounds = array<i64: 2, 1, 24>}, {pipeline_mode = #tpu.pipeline_mode<synchronous>, transform_indices = @transform_2, window_bounds = array<i64: 48, 32>}, {pipeline_mode = #tpu.pipeline_mode<synchronous>, transform_indices = @transform_3, window_bounds = array<i64: 2, 3, 32, 8>}, {pipeline_mode = #tpu.pipeline_mode<synchronous>, transform_indices = @transform_4, window_bounds = array<i64: 2, 3, 8, 16>}, {pipeline_mode = #tpu.pipeline_mode<synchronous>, transform_indices = @transform_5, window_bounds = array<i64: 2, 3, 16, 24>}, {pipeline_mode = #tpu.pipeline_mode<synchronous>, transform_indices = @transform_6, window_bounds = array<i64: 2, 24, 24>}, {pipeline_mode = #tpu.pipeline_mode<synchronous>, transform_indices = @transform_7, window_bounds = array<i64: 24, 1280>}, {pipeline_mode = #tpu.pipeline_mode<synchronous>, transform_indices = @transform_8, window_bounds = array<i64: 3, 128, 16>}, {pipeline_mode = #tpu.pipeline_mode<synchronous>, transform_indices = @transform_9, window_bounds = array<i64: 3, 16, 8>}, {pipeline_mode = #tpu.pipeline_mode<synchronous>, transform_indices = @transform_10, window_bounds = array<i64: 3, 8, 128>}, {pipeline_mode = #tpu.pipeline_mode<synchronous>, transform_indices = @transform_11, window_bounds = array<i64: 128, 128>}, {pipeline_mode = #tpu.pipeline_mode<synchronous>, transform_indices = @transform_12, window_bounds = array<i64: 22, 128>}, {transform_indices = @transform_13, window_bounds = array<i64: 2, 3, 24>}, {transform_indices = @transform_14, window_bounds = array<i64: 2, 16, 128>}]} {
    %c0 = arith.constant 0 : index
    %c0_0 = arith.constant 0 : index
    %0 = vector.load %arg13[%c0, %c0_0] : memref<22x128xf32, #tpu.memory_space<vmem>>, vector<22x128xf32>
    %c0_1 = arith.constant 0 : index
    %c0_2 = arith.constant 0 : index
    %c0_3 = arith.constant 0 : index
    %1 = vector.load %arg1[%c0_1, %c0_2, %c0_3] : memref<2x16x1xi32, #tpu.memory_space<vmem>>, vector<2x16x1xi32>
    %2 = vector.shape_cast %1 : vector<2x16x1xi32> to vector<32x1xi32>
    %3 = tpu.iota {dimensions = array<i32: 1>} : vector<32x48xi32>
    %4 = vector.broadcast %2 : vector<32x1xi32> to vector<32x48xi32>
    %5 = arith.cmpi eq, %4, %3 : vector<32x48xi32>
    %6 = arith.extui %5 : vector<32x48xi1> to vector<32x48xi32>
    %7 = arith.sitofp %6 : vector<32x48xi32> to vector<32x48xf32>
    %c0_4 = arith.constant 0 : index
    %c0_5 = arith.constant 0 : index
    %8 = vector.load %arg3[%c0_4, %c0_5] : memref<48x32xf32, #tpu.memory_space<vmem>>, vector<48x32xf32>
    %cst = arith.constant dense<0.000000e+00> : vector<32x32xf32>
    %9 = tpu.matmul %7, %8, %cst {dimension_numbers = #tpu.dot_dimension_numbers<[1], [0], [0], [1], [0, 0, 1, 1], [], []>} : vector<32x48xf32>, vector<48x32xf32>, vector<32x32xf32> -> vector<32x32xf32>
    %10 = vector.shape_cast %9 : vector<32x32xf32> to vector<2x16x32xf32>
    %c0_6 = arith.constant 0 : index
    %c0_7 = arith.constant 0 : index
    %c0_8 = arith.constant 0 : index
    %c0_9 = arith.constant 0 : index
    %11 = vector.load %arg4[%c0_6, %c0_7, %c0_8, %c0_9] : memref<2x3x32x8xbf16, #tpu.memory_space<vmem>>, vector<2x3x32x8xbf16>
    %12 = vector.extract_strided_slice %11 {offsets = [0, 0, 0, 0], sizes = [1, 3, 32, 8], strides = [1, 1, 1, 1]} : vector<2x3x32x8xbf16> to vector<1x3x32x8xbf16>
    %13 = vector.shape_cast %12 : vector<1x3x32x8xbf16> to vector<3x32x8xbf16>
    %14 = arith.truncf %10 : vector<2x16x32xf32> to vector<2x16x32xbf16>
    %cst_10 = arith.constant 0.000000e+00 : bf16
    %15 = vector.broadcast %cst_10 : bf16 to vector<2x1x32xbf16>
    %16 = tpu.concatenate %15, %14, %15 in 1 : vector<2x1x32xbf16>, vector<2x16x32xbf16>, vector<2x1x32xbf16> -> vector<2x18x32xbf16>
    %17 = vector.extract_strided_slice %16 {offsets = [0, 0, 0], sizes = [2, 16, 32], strides = [1, 1, 1]} : vector<2x18x32xbf16> to vector<2x16x32xbf16>
    %18 = vector.shape_cast %17 : vector<2x16x32xbf16> to vector<32x32xbf16>
    %19 = vector.extract_strided_slice %13 {offsets = [0, 0, 0], sizes = [1, 32, 8], strides = [1, 1, 1]} : vector<3x32x8xbf16> to vector<1x32x8xbf16>
    %20 = vector.shape_cast %19 : vector<1x32x8xbf16> to vector<32x8xbf16>
    %cst_11 = arith.constant dense<0.000000e+00> : vector<32x8xf32>
    %21 = tpu.matmul %18, %20, %cst_11 {dimension_numbers = #tpu.dot_dimension_numbers<[1], [0], [0], [1], [0, 0, 1, 1], [], []>} : vector<32x32xbf16>, vector<32x8xbf16>, vector<32x8xf32> -> vector<32x8xf32>
    %22 = vector.extract_strided_slice %16 {offsets = [0, 1, 0], sizes = [2, 16, 32], strides = [1, 1, 1]} : vector<2x18x32xbf16> to vector<2x16x32xbf16>
    %23 = vector.shape_cast %22 : vector<2x16x32xbf16> to vector<32x32xbf16>
    %24 = vector.extract_strided_slice %13 {offsets = [1, 0, 0], sizes = [1, 32, 8], strides = [1, 1, 1]} : vector<3x32x8xbf16> to vector<1x32x8xbf16>
    %25 = vector.shape_cast %24 : vector<1x32x8xbf16> to vector<32x8xbf16>
    %cst_12 = arith.constant dense<0.000000e+00> : vector<32x8xf32>
    %26 = tpu.matmul %23, %25, %cst_12 {dimension_numbers = #tpu.dot_dimension_numbers<[1], [0], [0], [1], [0, 0, 1, 1], [], []>} : vector<32x32xbf16>, vector<32x8xbf16>, vector<32x8xf32> -> vector<32x8xf32>
    %27 = arith.addf %21, %26 : vector<32x8xf32>
    %28 = vector.extract_strided_slice %16 {offsets = [0, 2, 0], sizes = [2, 16, 32], strides = [1, 1, 1]} : vector<2x18x32xbf16> to vector<2x16x32xbf16>
    %29 = vector.shape_cast %28 : vector<2x16x32xbf16> to vector<32x32xbf16>
    %30 = vector.extract_strided_slice %13 {offsets = [2, 0, 0], sizes = [1, 32, 8], strides = [1, 1, 1]} : vector<3x32x8xbf16> to vector<1x32x8xbf16>
    %31 = vector.shape_cast %30 : vector<1x32x8xbf16> to vector<32x8xbf16>
    %cst_13 = arith.constant dense<0.000000e+00> : vector<32x8xf32>
    %32 = tpu.matmul %29, %31, %cst_13 {dimension_numbers = #tpu.dot_dimension_numbers<[1], [0], [0], [1], [0, 0, 1, 1], [], []>} : vector<32x32xbf16>, vector<32x8xbf16>, vector<32x8xf32> -> vector<32x8xf32>
    %33 = arith.addf %27, %32 : vector<32x8xf32>
    %34 = vector.shape_cast %33 : vector<32x8xf32> to vector<2x16x8xf32>
    %35 = vector.extract_strided_slice %0 {offsets = [0, 0], sizes = [1, 8], strides = [1, 1]} : vector<22x128xf32> to vector<1x8xf32>
    %36 = vector.shape_cast %35 : vector<1x8xf32> to vector<8xf32>
    %37 = vector.shape_cast %36 : vector<8xf32> to vector<1x1x8xf32>
    %38 = vector.broadcast %37 : vector<1x1x8xf32> to vector<2x16x8xf32>
    %39 = arith.addf %34, %38 : vector<2x16x8xf32>
    %40 = vector.extract_strided_slice %11 {offsets = [1, 0, 0, 0], sizes = [1, 3, 32, 8], strides = [1, 1, 1, 1]} : vector<2x3x32x8xbf16> to vector<1x3x32x8xbf16>
    %41 = vector.shape_cast %40 : vector<1x3x32x8xbf16> to vector<3x32x8xbf16>
    %42 = arith.truncf %10 : vector<2x16x32xf32> to vector<2x16x32xbf16>
    %cst_14 = arith.constant 0.000000e+00 : bf16
    %43 = vector.broadcast %cst_14 : bf16 to vector<2x1x32xbf16>
    %44 = tpu.concatenate %43, %42, %43 in 1 : vector<2x1x32xbf16>, vector<2x16x32xbf16>, vector<2x1x32xbf16> -> vector<2x18x32xbf16>
    %45 = vector.extract_strided_slice %44 {offsets = [0, 0, 0], sizes = [2, 16, 32], strides = [1, 1, 1]} : vector<2x18x32xbf16> to vector<2x16x32xbf16>
    %46 = vector.shape_cast %45 : vector<2x16x32xbf16> to vector<32x32xbf16>
    %47 = vector.extract_strided_slice %41 {offsets = [0, 0, 0], sizes = [1, 32, 8], strides = [1, 1, 1]} : vector<3x32x8xbf16> to vector<1x32x8xbf16>
    %48 = vector.shape_cast %47 : vector<1x32x8xbf16> to vector<32x8xbf16>
    %cst_15 = arith.constant dense<0.000000e+00> : vector<32x8xf32>
    %49 = tpu.matmul %46, %48, %cst_15 {dimension_numbers = #tpu.dot_dimension_numbers<[1], [0], [0], [1], [0, 0, 1, 1], [], []>} : vector<32x32xbf16>, vector<32x8xbf16>, vector<32x8xf32> -> vector<32x8xf32>
    %50 = vector.extract_strided_slice %44 {offsets = [0, 1, 0], sizes = [2, 16, 32], strides = [1, 1, 1]} : vector<2x18x32xbf16> to vector<2x16x32xbf16>
    %51 = vector.shape_cast %50 : vector<2x16x32xbf16> to vector<32x32xbf16>
    %52 = vector.extract_strided_slice %41 {offsets = [1, 0, 0], sizes = [1, 32, 8], strides = [1, 1, 1]} : vector<3x32x8xbf16> to vector<1x32x8xbf16>
    %53 = vector.shape_cast %52 : vector<1x32x8xbf16> to vector<32x8xbf16>
    %cst_16 = arith.constant dense<0.000000e+00> : vector<32x8xf32>
    %54 = tpu.matmul %51, %53, %cst_16 {dimension_numbers = #tpu.dot_dimension_numbers<[1], [0], [0], [1], [0, 0, 1, 1], [], []>} : vector<32x32xbf16>, vector<32x8xbf16>, vector<32x8xf32> -> vector<32x8xf32>
    %55 = arith.addf %49, %54 : vector<32x8xf32>
    %56 = vector.extract_strided_slice %44 {offsets = [0, 2, 0], sizes = [2, 16, 32], strides = [1, 1, 1]} : vector<2x18x32xbf16> to vector<2x16x32xbf16>
    %57 = vector.shape_cast %56 : vector<2x16x32xbf16> to vector<32x32xbf16>
    %58 = vector.extract_strided_slice %41 {offsets = [2, 0, 0], sizes = [1, 32, 8], strides = [1, 1, 1]} : vector<3x32x8xbf16> to vector<1x32x8xbf16>
    %59 = vector.shape_cast %58 : vector<1x32x8xbf16> to vector<32x8xbf16>
    %cst_17 = arith.constant dense<0.000000e+00> : vector<32x8xf32>
    %60 = tpu.matmul %57, %59, %cst_17 {dimension_numbers = #tpu.dot_dimension_numbers<[1], [0], [0], [1], [0, 0, 1, 1], [], []>} : vector<32x32xbf16>, vector<32x8xbf16>, vector<32x8xf32> -> vector<32x8xf32>
    %61 = arith.addf %55, %60 : vector<32x8xf32>
    %62 = vector.shape_cast %61 : vector<32x8xf32> to vector<2x16x8xf32>
    %63 = vector.extract_strided_slice %0 {offsets = [1, 0], sizes = [1, 8], strides = [1, 1]} : vector<22x128xf32> to vector<1x8xf32>
    %64 = vector.shape_cast %63 : vector<1x8xf32> to vector<8xf32>
    %65 = vector.shape_cast %64 : vector<8xf32> to vector<1x1x8xf32>
    %66 = vector.broadcast %65 : vector<1x1x8xf32> to vector<2x16x8xf32>
    %67 = arith.addf %62, %66 : vector<2x16x8xf32>
    %68 = arith.negf %67 : vector<2x16x8xf32>
    %69 = math.exp %68 : vector<2x16x8xf32>
    %cst_18 = arith.constant 1.000000e+00 : f32
    %70 = vector.broadcast %cst_18 : f32 to vector<2x16x8xf32>
    %71 = arith.addf %70, %69 : vector<2x16x8xf32>
    %72 = arith.divf %70, %71 : vector<2x16x8xf32>
    %73 = arith.mulf %39, %72 : vector<2x16x8xf32>
    %c0_19 = arith.constant 0 : index
    %c0_20 = arith.constant 0 : index
    %c0_21 = arith.constant 0 : index
    %c0_22 = arith.constant 0 : index
    %74 = vector.load %arg5[%c0_19, %c0_20, %c0_21, %c0_22] : memref<2x3x8x16xbf16, #tpu.memory_space<vmem>>, vector<2x3x8x16xbf16>
    %75 = vector.extract_strided_slice %74 {offsets = [0, 0, 0, 0], sizes = [1, 3, 8, 16], strides = [1, 1, 1, 1]} : vector<2x3x8x16xbf16> to vector<1x3x8x16xbf16>
    %76 = vector.shape_cast %75 : vector<1x3x8x16xbf16> to vector<3x8x16xbf16>
    %77 = arith.truncf %73 : vector<2x16x8xf32> to vector<2x16x8xbf16>
    %cst_23 = arith.constant 0.000000e+00 : bf16
    %78 = vector.broadcast %cst_23 : bf16 to vector<2x1x8xbf16>
    %79 = tpu.concatenate %78, %77, %78 in 1 : vector<2x1x8xbf16>, vector<2x16x8xbf16>, vector<2x1x8xbf16> -> vector<2x18x8xbf16>
    %80 = vector.extract_strided_slice %79 {offsets = [0, 0, 0], sizes = [2, 16, 8], strides = [1, 1, 1]} : vector<2x18x8xbf16> to vector<2x16x8xbf16>
    %81 = vector.shape_cast %80 : vector<2x16x8xbf16> to vector<32x8xbf16>
    %82 = vector.extract_strided_slice %76 {offsets = [0, 0, 0], sizes = [1, 8, 16], strides = [1, 1, 1]} : vector<3x8x16xbf16> to vector<1x8x16xbf16>
    %83 = vector.shape_cast %82 : vector<1x8x16xbf16> to vector<8x16xbf16>
    %cst_24 = arith.constant dense<0.000000e+00> : vector<32x16xf32>
    %84 = tpu.matmul %81, %83, %cst_24 {dimension_numbers = #tpu.dot_dimension_numbers<[1], [0], [0], [1], [0, 0, 1, 1], [], []>} : vector<32x8xbf16>, vector<8x16xbf16>, vector<32x16xf32> -> vector<32x16xf32>
    %85 = vector.extract_strided_slice %79 {offsets = [0, 1, 0], sizes = [2, 16, 8], strides = [1, 1, 1]} : vector<2x18x8xbf16> to vector<2x16x8xbf16>
    %86 = vector.shape_cast %85 : vector<2x16x8xbf16> to vector<32x8xbf16>
    %87 = vector.extract_strided_slice %76 {offsets = [1, 0, 0], sizes = [1, 8, 16], strides = [1, 1, 1]} : vector<3x8x16xbf16> to vector<1x8x16xbf16>
    %88 = vector.shape_cast %87 : vector<1x8x16xbf16> to vector<8x16xbf16>
    %cst_25 = arith.constant dense<0.000000e+00> : vector<32x16xf32>
    %89 = tpu.matmul %86, %88, %cst_25 {dimension_numbers = #tpu.dot_dimension_numbers<[1], [0], [0], [1], [0, 0, 1, 1], [], []>} : vector<32x8xbf16>, vector<8x16xbf16>, vector<32x16xf32> -> vector<32x16xf32>
    %90 = arith.addf %84, %89 : vector<32x16xf32>
    %91 = vector.extract_strided_slice %79 {offsets = [0, 2, 0], sizes = [2, 16, 8], strides = [1, 1, 1]} : vector<2x18x8xbf16> to vector<2x16x8xbf16>
    %92 = vector.shape_cast %91 : vector<2x16x8xbf16> to vector<32x8xbf16>
    %93 = vector.extract_strided_slice %76 {offsets = [2, 0, 0], sizes = [1, 8, 16], strides = [1, 1, 1]} : vector<3x8x16xbf16> to vector<1x8x16xbf16>
    %94 = vector.shape_cast %93 : vector<1x8x16xbf16> to vector<8x16xbf16>
    %cst_26 = arith.constant dense<0.000000e+00> : vector<32x16xf32>
    %95 = tpu.matmul %92, %94, %cst_26 {dimension_numbers = #tpu.dot_dimension_numbers<[1], [0], [0], [1], [0, 0, 1, 1], [], []>} : vector<32x8xbf16>, vector<8x16xbf16>, vector<32x16xf32> -> vector<32x16xf32>
    %96 = arith.addf %90, %95 : vector<32x16xf32>
    %97 = vector.shape_cast %96 : vector<32x16xf32> to vector<2x16x16xf32>
    %98 = vector.extract_strided_slice %0 {offsets = [2, 0], sizes = [1, 16], strides = [1, 1]} : vector<22x128xf32> to vector<1x16xf32>
    %99 = vector.shape_cast %98 : vector<1x16xf32> to vector<16xf32>
    %100 = vector.shape_cast %99 : vector<16xf32> to vector<1x1x16xf32>
    %101 = vector.broadcast %100 : vector<1x1x16xf32> to vector<2x16x16xf32>
    %102 = arith.addf %97, %101 : vector<2x16x16xf32>
    %103 = vector.extract_strided_slice %74 {offsets = [1, 0, 0, 0], sizes = [1, 3, 8, 16], strides = [1, 1, 1, 1]} : vector<2x3x8x16xbf16> to vector<1x3x8x16xbf16>
    %104 = vector.shape_cast %103 : vector<1x3x8x16xbf16> to vector<3x8x16xbf16>
    %105 = arith.truncf %73 : vector<2x16x8xf32> to vector<2x16x8xbf16>
    %cst_27 = arith.constant 0.000000e+00 : bf16
    %106 = vector.broadcast %cst_27 : bf16 to vector<2x1x8xbf16>
    %107 = tpu.concatenate %106, %105, %106 in 1 : vector<2x1x8xbf16>, vector<2x16x8xbf16>, vector<2x1x8xbf16> -> vector<2x18x8xbf16>
    %108 = vector.extract_strided_slice %107 {offsets = [0, 0, 0], sizes = [2, 16, 8], strides = [1, 1, 1]} : vector<2x18x8xbf16> to vector<2x16x8xbf16>
    %109 = vector.shape_cast %108 : vector<2x16x8xbf16> to vector<32x8xbf16>
    %110 = vector.extract_strided_slice %104 {offsets = [0, 0, 0], sizes = [1, 8, 16], strides = [1, 1, 1]} : vector<3x8x16xbf16> to vector<1x8x16xbf16>
    %111 = vector.shape_cast %110 : vector<1x8x16xbf16> to vector<8x16xbf16>
    %cst_28 = arith.constant dense<0.000000e+00> : vector<32x16xf32>
    %112 = tpu.matmul %109, %111, %cst_28 {dimension_numbers = #tpu.dot_dimension_numbers<[1], [0], [0], [1], [0, 0, 1, 1], [], []>} : vector<32x8xbf16>, vector<8x16xbf16>, vector<32x16xf32> -> vector<32x16xf32>
    %113 = vector.extract_strided_slice %107 {offsets = [0, 1, 0], sizes = [2, 16, 8], strides = [1, 1, 1]} : vector<2x18x8xbf16> to vector<2x16x8xbf16>
    %114 = vector.shape_cast %113 : vector<2x16x8xbf16> to vector<32x8xbf16>
    %115 = vector.extract_strided_slice %104 {offsets = [1, 0, 0], sizes = [1, 8, 16], strides = [1, 1, 1]} : vector<3x8x16xbf16> to vector<1x8x16xbf16>
    %116 = vector.shape_cast %115 : vector<1x8x16xbf16> to vector<8x16xbf16>
    %cst_29 = arith.constant dense<0.000000e+00> : vector<32x16xf32>
    %117 = tpu.matmul %114, %116, %cst_29 {dimension_numbers = #tpu.dot_dimension_numbers<[1], [0], [0], [1], [0, 0, 1, 1], [], []>} : vector<32x8xbf16>, vector<8x16xbf16>, vector<32x16xf32> -> vector<32x16xf32>
    %118 = arith.addf %112, %117 : vector<32x16xf32>
    %119 = vector.extract_strided_slice %107 {offsets = [0, 2, 0], sizes = [2, 16, 8], strides = [1, 1, 1]} : vector<2x18x8xbf16> to vector<2x16x8xbf16>
    %120 = vector.shape_cast %119 : vector<2x16x8xbf16> to vector<32x8xbf16>
    %121 = vector.extract_strided_slice %104 {offsets = [2, 0, 0], sizes = [1, 8, 16], strides = [1, 1, 1]} : vector<3x8x16xbf16> to vector<1x8x16xbf16>
    %122 = vector.shape_cast %121 : vector<1x8x16xbf16> to vector<8x16xbf16>
    %cst_30 = arith.constant dense<0.000000e+00> : vector<32x16xf32>
    %123 = tpu.matmul %120, %122, %cst_30 {dimension_numbers = #tpu.dot_dimension_numbers<[1], [0], [0], [1], [0, 0, 1, 1], [], []>} : vector<32x8xbf16>, vector<8x16xbf16>, vector<32x16xf32> -> vector<32x16xf32>
    %124 = arith.addf %118, %123 : vector<32x16xf32>
    %125 = vector.shape_cast %124 : vector<32x16xf32> to vector<2x16x16xf32>
    %126 = vector.extract_strided_slice %0 {offsets = [3, 0], sizes = [1, 16], strides = [1, 1]} : vector<22x128xf32> to vector<1x16xf32>
    %127 = vector.shape_cast %126 : vector<1x16xf32> to vector<16xf32>
    %128 = vector.shape_cast %127 : vector<16xf32> to vector<1x1x16xf32>
    %129 = vector.broadcast %128 : vector<1x1x16xf32> to vector<2x16x16xf32>
    %130 = arith.addf %125, %129 : vector<2x16x16xf32>
    %131 = arith.negf %130 : vector<2x16x16xf32>
    %132 = math.exp %131 : vector<2x16x16xf32>
    %cst_31 = arith.constant 1.000000e+00 : f32
    %133 = vector.broadcast %cst_31 : f32 to vector<2x16x16xf32>
    %134 = arith.addf %133, %132 : vector<2x16x16xf32>
    %135 = arith.divf %133, %134 : vector<2x16x16xf32>
    %136 = arith.mulf %102, %135 : vector<2x16x16xf32>
    %c0_32 = arith.constant 0 : index
    %c0_33 = arith.constant 0 : index
    %c0_34 = arith.constant 0 : index
    %c0_35 = arith.constant 0 : index
    %137 = vector.load %arg6[%c0_32, %c0_33, %c0_34, %c0_35] : memref<2x3x16x24xbf16, #tpu.memory_space<vmem>>, vector<2x3x16x24xbf16>
    %138 = vector.extract_strided_slice %137 {offsets = [0, 0, 0, 0], sizes = [1, 3, 16, 24], strides = [1, 1, 1, 1]} : vector<2x3x16x24xbf16> to vector<1x3x16x24xbf16>
    %139 = vector.shape_cast %138 : vector<1x3x16x24xbf16> to vector<3x16x24xbf16>
    %140 = arith.truncf %136 : vector<2x16x16xf32> to vector<2x16x16xbf16>
    %cst_36 = arith.constant 0.000000e+00 : bf16
    %141 = vector.broadcast %cst_36 : bf16 to vector<2x1x16xbf16>
    %142 = tpu.concatenate %141, %140, %141 in 1 : vector<2x1x16xbf16>, vector<2x16x16xbf16>, vector<2x1x16xbf16> -> vector<2x18x16xbf16>
    %143 = vector.extract_strided_slice %142 {offsets = [0, 0, 0], sizes = [2, 16, 16], strides = [1, 1, 1]} : vector<2x18x16xbf16> to vector<2x16x16xbf16>
    %144 = vector.shape_cast %143 : vector<2x16x16xbf16> to vector<32x16xbf16>
    %145 = vector.extract_strided_slice %139 {offsets = [0, 0, 0], sizes = [1, 16, 24], strides = [1, 1, 1]} : vector<3x16x24xbf16> to vector<1x16x24xbf16>
    %146 = vector.shape_cast %145 : vector<1x16x24xbf16> to vector<16x24xbf16>
    %cst_37 = arith.constant dense<0.000000e+00> : vector<32x24xf32>
    %147 = tpu.matmul %144, %146, %cst_37 {dimension_numbers = #tpu.dot_dimension_numbers<[1], [0], [0], [1], [0, 0, 1, 1], [], []>} : vector<32x16xbf16>, vector<16x24xbf16>, vector<32x24xf32> -> vector<32x24xf32>
    %148 = vector.extract_strided_slice %142 {offsets = [0, 1, 0], sizes = [2, 16, 16], strides = [1, 1, 1]} : vector<2x18x16xbf16> to vector<2x16x16xbf16>
    %149 = vector.shape_cast %148 : vector<2x16x16xbf16> to vector<32x16xbf16>
    %150 = vector.extract_strided_slice %139 {offsets = [1, 0, 0], sizes = [1, 16, 24], strides = [1, 1, 1]} : vector<3x16x24xbf16> to vector<1x16x24xbf16>
    %151 = vector.shape_cast %150 : vector<1x16x24xbf16> to vector<16x24xbf16>
    %cst_38 = arith.constant dense<0.000000e+00> : vector<32x24xf32>
    %152 = tpu.matmul %149, %151, %cst_38 {dimension_numbers = #tpu.dot_dimension_numbers<[1], [0], [0], [1], [0, 0, 1, 1], [], []>} : vector<32x16xbf16>, vector<16x24xbf16>, vector<32x24xf32> -> vector<32x24xf32>
    %153 = arith.addf %147, %152 : vector<32x24xf32>
    %154 = vector.extract_strided_slice %142 {offsets = [0, 2, 0], sizes = [2, 16, 16], strides = [1, 1, 1]} : vector<2x18x16xbf16> to vector<2x16x16xbf16>
    %155 = vector.shape_cast %154 : vector<2x16x16xbf16> to vector<32x16xbf16>
    %156 = vector.extract_strided_slice %139 {offsets = [2, 0, 0], sizes = [1, 16, 24], strides = [1, 1, 1]} : vector<3x16x24xbf16> to vector<1x16x24xbf16>
    %157 = vector.shape_cast %156 : vector<1x16x24xbf16> to vector<16x24xbf16>
    %cst_39 = arith.constant dense<0.000000e+00> : vector<32x24xf32>
    %158 = tpu.matmul %155, %157, %cst_39 {dimension_numbers = #tpu.dot_dimension_numbers<[1], [0], [0], [1], [0, 0, 1, 1], [], []>} : vector<32x16xbf16>, vector<16x24xbf16>, vector<32x24xf32> -> vector<32x24xf32>
    %159 = arith.addf %153, %158 : vector<32x24xf32>
    %160 = vector.shape_cast %159 : vector<32x24xf32> to vector<2x16x24xf32>
    %161 = vector.extract_strided_slice %0 {offsets = [4, 0], sizes = [1, 24], strides = [1, 1]} : vector<22x128xf32> to vector<1x24xf32>
    %162 = vector.shape_cast %161 : vector<1x24xf32> to vector<24xf32>
    %163 = vector.shape_cast %162 : vector<24xf32> to vector<1x1x24xf32>
    %164 = vector.broadcast %163 : vector<1x1x24xf32> to vector<2x16x24xf32>
    %165 = arith.addf %160, %164 : vector<2x16x24xf32>
    %166 = vector.extract_strided_slice %137 {offsets = [1, 0, 0, 0], sizes = [1, 3, 16, 24], strides = [1, 1, 1, 1]} : vector<2x3x16x24xbf16> to vector<1x3x16x24xbf16>
    %167 = vector.shape_cast %166 : vector<1x3x16x24xbf16> to vector<3x16x24xbf16>
    %168 = arith.truncf %136 : vector<2x16x16xf32> to vector<2x16x16xbf16>
    %cst_40 = arith.constant 0.000000e+00 : bf16
    %169 = vector.broadcast %cst_40 : bf16 to vector<2x1x16xbf16>
    %170 = tpu.concatenate %169, %168, %169 in 1 : vector<2x1x16xbf16>, vector<2x16x16xbf16>, vector<2x1x16xbf16> -> vector<2x18x16xbf16>
    %171 = vector.extract_strided_slice %170 {offsets = [0, 0, 0], sizes = [2, 16, 16], strides = [1, 1, 1]} : vector<2x18x16xbf16> to vector<2x16x16xbf16>
    %172 = vector.shape_cast %171 : vector<2x16x16xbf16> to vector<32x16xbf16>
    %173 = vector.extract_strided_slice %167 {offsets = [0, 0, 0], sizes = [1, 16, 24], strides = [1, 1, 1]} : vector<3x16x24xbf16> to vector<1x16x24xbf16>
    %174 = vector.shape_cast %173 : vector<1x16x24xbf16> to vector<16x24xbf16>
    %cst_41 = arith.constant dense<0.000000e+00> : vector<32x24xf32>
    %175 = tpu.matmul %172, %174, %cst_41 {dimension_numbers = #tpu.dot_dimension_numbers<[1], [0], [0], [1], [0, 0, 1, 1], [], []>} : vector<32x16xbf16>, vector<16x24xbf16>, vector<32x24xf32> -> vector<32x24xf32>
    %176 = vector.extract_strided_slice %170 {offsets = [0, 1, 0], sizes = [2, 16, 16], strides = [1, 1, 1]} : vector<2x18x16xbf16> to vector<2x16x16xbf16>
    %177 = vector.shape_cast %176 : vector<2x16x16xbf16> to vector<32x16xbf16>
    %178 = vector.extract_strided_slice %167 {offsets = [1, 0, 0], sizes = [1, 16, 24], strides = [1, 1, 1]} : vector<3x16x24xbf16> to vector<1x16x24xbf16>
    %179 = vector.shape_cast %178 : vector<1x16x24xbf16> to vector<16x24xbf16>
    %cst_42 = arith.constant dense<0.000000e+00> : vector<32x24xf32>
    %180 = tpu.matmul %177, %179, %cst_42 {dimension_numbers = #tpu.dot_dimension_numbers<[1], [0], [0], [1], [0, 0, 1, 1], [], []>} : vector<32x16xbf16>, vector<16x24xbf16>, vector<32x24xf32> -> vector<32x24xf32>
    %181 = arith.addf %175, %180 : vector<32x24xf32>
    %182 = vector.extract_strided_slice %170 {offsets = [0, 2, 0], sizes = [2, 16, 16], strides = [1, 1, 1]} : vector<2x18x16xbf16> to vector<2x16x16xbf16>
    %183 = vector.shape_cast %182 : vector<2x16x16xbf16> to vector<32x16xbf16>
    %184 = vector.extract_strided_slice %167 {offsets = [2, 0, 0], sizes = [1, 16, 24], strides = [1, 1, 1]} : vector<3x16x24xbf16> to vector<1x16x24xbf16>
    %185 = vector.shape_cast %184 : vector<1x16x24xbf16> to vector<16x24xbf16>
    %cst_43 = arith.constant dense<0.000000e+00> : vector<32x24xf32>
    %186 = tpu.matmul %183, %185, %cst_43 {dimension_numbers = #tpu.dot_dimension_numbers<[1], [0], [0], [1], [0, 0, 1, 1], [], []>} : vector<32x16xbf16>, vector<16x24xbf16>, vector<32x24xf32> -> vector<32x24xf32>
    %187 = arith.addf %181, %186 : vector<32x24xf32>
    %188 = vector.shape_cast %187 : vector<32x24xf32> to vector<2x16x24xf32>
    %189 = vector.extract_strided_slice %0 {offsets = [5, 0], sizes = [1, 24], strides = [1, 1]} : vector<22x128xf32> to vector<1x24xf32>
    %190 = vector.shape_cast %189 : vector<1x24xf32> to vector<24xf32>
    %191 = vector.shape_cast %190 : vector<24xf32> to vector<1x1x24xf32>
    %192 = vector.broadcast %191 : vector<1x1x24xf32> to vector<2x16x24xf32>
    %193 = arith.addf %188, %192 : vector<2x16x24xf32>
    %194 = arith.negf %193 : vector<2x16x24xf32>
    %195 = math.exp %194 : vector<2x16x24xf32>
    %cst_44 = arith.constant 1.000000e+00 : f32
    %196 = vector.broadcast %cst_44 : f32 to vector<2x16x24xf32>
    %197 = arith.addf %196, %195 : vector<2x16x24xf32>
    %198 = arith.divf %196, %197 : vector<2x16x24xf32>
    %199 = arith.mulf %165, %198 : vector<2x16x24xf32>
    %c0_45 = arith.constant 0 : index
    %c0_46 = arith.constant 0 : index
    %c0_47 = arith.constant 0 : index
    %200 = vector.load %arg7[%c0_45, %c0_46, %c0_47] : memref<2x24x24xbf16, #tpu.memory_space<vmem>>, vector<2x24x24xbf16>
    %cst_48 = arith.constant dense<0.000000e+00> : vector<2x24xf32>
    %201 = vector.multi_reduction <add>, %199, %cst_48 [1] : vector<2x16x24xf32> to vector<2x24xf32>
    %cst_49 = arith.constant 1.600000e+01 : f32
    %202 = vector.broadcast %cst_49 : f32 to vector<2x24xf32>
    %203 = arith.divf %201, %202 : vector<2x24xf32>
    %204 = arith.truncf %203 : vector<2x24xf32> to vector<2x24xbf16>
    %205 = vector.extract_strided_slice %200 {offsets = [0, 0, 0], sizes = [1, 24, 24], strides = [1, 1, 1]} : vector<2x24x24xbf16> to vector<1x24x24xbf16>
    %206 = vector.shape_cast %205 : vector<1x24x24xbf16> to vector<24x24xbf16>
    %cst_50 = arith.constant dense<0.000000e+00> : vector<2x24xf32>
    %207 = tpu.matmul %204, %206, %cst_50 {dimension_numbers = #tpu.dot_dimension_numbers<[1], [0], [0], [1], [0, 0, 1, 1], [], []>} : vector<2x24xbf16>, vector<24x24xbf16>, vector<2x24xf32> -> vector<2x24xf32>
    %208 = vector.extract_strided_slice %0 {offsets = [6, 0], sizes = [1, 24], strides = [1, 1]} : vector<22x128xf32> to vector<1x24xf32>
    %209 = vector.shape_cast %208 : vector<1x24xf32> to vector<24xf32>
    %210 = vector.shape_cast %209 : vector<24xf32> to vector<1x24xf32>
    %211 = vector.broadcast %210 : vector<1x24xf32> to vector<2x24xf32>
    %212 = arith.addf %207, %211 : vector<2x24xf32>
    %cst_51 = arith.constant 0.000000e+00 : f32
    %213 = vector.broadcast %cst_51 : f32 to vector<2x24xf32>
    %214 = arith.maximumf %212, %213 : vector<2x24xf32>
    %215 = vector.extract_strided_slice %200 {offsets = [1, 0, 0], sizes = [1, 24, 24], strides = [1, 1, 1]} : vector<2x24x24xbf16> to vector<1x24x24xbf16>
    %216 = vector.shape_cast %215 : vector<1x24x24xbf16> to vector<24x24xbf16>
    %cst_52 = arith.constant dense<0.000000e+00> : vector<2x24xf32>
    %217 = tpu.matmul %204, %216, %cst_52 {dimension_numbers = #tpu.dot_dimension_numbers<[1], [0], [0], [1], [0, 0, 1, 1], [], []>} : vector<2x24xbf16>, vector<24x24xbf16>, vector<2x24xf32> -> vector<2x24xf32>
    %218 = vector.extract_strided_slice %0 {offsets = [7, 0], sizes = [1, 24], strides = [1, 1]} : vector<22x128xf32> to vector<1x24xf32>
    %219 = vector.shape_cast %218 : vector<1x24xf32> to vector<24xf32>
    %220 = vector.shape_cast %219 : vector<24xf32> to vector<1x24xf32>
    %221 = vector.broadcast %220 : vector<1x24xf32> to vector<2x24xf32>
    %222 = arith.addf %217, %221 : vector<2x24xf32>
    %cst_53 = arith.constant 0.000000e+00 : f32
    %223 = vector.broadcast %cst_53 : f32 to vector<2x24xf32>
    %224 = arith.maximumf %222, %223 : vector<2x24xf32>
    %c0_54 = arith.constant 0 : index
    %c0_55 = arith.constant 0 : index
    %c0_56 = arith.constant 0 : index
    %225 = vector.load %arg2[%c0_54, %c0_55, %c0_56] : memref<2x1x24xf32, #tpu.memory_space<vmem>>, vector<2x1x24xf32>
    %226 = vector.shape_cast %225 : vector<2x1x24xf32> to vector<2x24xf32>
    %cst_57 = arith.constant 5.000000e-01 : f32
    %227 = vector.broadcast %cst_57 : f32 to vector<2x24xf32>
    %228 = arith.mulf %227, %224 : vector<2x24xf32>
    %229 = math.exp %228 : vector<2x24xf32>
    %230 = arith.mulf %226, %229 : vector<2x24xf32>
    %231 = arith.addf %230, %214 : vector<2x24xf32>
    %232 = vector.shape_cast %231 : vector<2x24xf32> to vector<2x1x24xf32>
    %233 = vector.shape_cast %214 : vector<2x24xf32> to vector<2x1x24xf32>
    %234 = vector.shape_cast %224 : vector<2x24xf32> to vector<2x1x24xf32>
    %235 = tpu.concatenate %232, %233, %234 in 1 : vector<2x1x24xf32>, vector<2x1x24xf32>, vector<2x1x24xf32> -> vector<2x3x24xf32>
    %c0_58 = arith.constant 0 : index
    %c0_59 = arith.constant 0 : index
    %c0_60 = arith.constant 0 : index
    %236 = vector.load %arg14[%c0_58, %c0_59, %c0_60] : memref<2x3x24xf32, #tpu.memory_space<vmem>>, vector<2x3x24xf32>
    tpu.vector_store %arg14[%c0_58, %c0_59, %c0_60], %235 {strides = array<i32>} : memref<2x3x24xf32, #tpu.memory_space<vmem>>, vector<2x3x24xf32>,
    %237 = arith.truncf %231 : vector<2x24xf32> to vector<2x24xbf16>
    %c0_61 = arith.constant 0 : index
    %c0_62 = arith.constant 0 : index
    %238 = vector.load %arg8[%c0_61, %c0_62] : memref<24x1280xbf16, #tpu.memory_space<vmem>>, vector<24x1280xbf16>
    %cst_63 = arith.constant dense<0.000000e+00> : vector<2x1280xf32>
    %239 = tpu.matmul %237, %238, %cst_63 {dimension_numbers = #tpu.dot_dimension_numbers<[1], [0], [0], [1], [0, 0, 1, 1], [], []>} : vector<2x24xbf16>, vector<24x1280xbf16>, vector<2x1280xf32> -> vector<2x1280xf32>
    %240 = vector.shape_cast %239 : vector<2x1280xf32> to vector<2x10x128xf32>
    %241 = vector.extract_strided_slice %0 {offsets = [12, 0], sizes = [10, 128], strides = [1, 1]} : vector<22x128xf32> to vector<10x128xf32>
    %242 = vector.shape_cast %241 : vector<10x128xf32> to vector<1x10x128xf32>
    %243 = vector.broadcast %242 : vector<1x10x128xf32> to vector<2x10x128xf32>
    %244 = arith.addf %240, %243 : vector<2x10x128xf32>
    %cst_64 = arith.constant 0.000000e+00 : f32
    %245 = vector.broadcast %cst_64 : f32 to vector<2x10x128xf32>
    %246 = arith.maximumf %244, %245 : vector<2x10x128xf32>
    %c0_65 = arith.constant 0 : index
    %c0_66 = arith.constant 0 : index
    %c0_67 = arith.constant 0 : index
    %247 = vector.load %arg9[%c0_65, %c0_66, %c0_67] : memref<3x128x16xbf16, #tpu.memory_space<vmem>>, vector<3x128x16xbf16>
    %248 = arith.truncf %246 : vector<2x10x128xf32> to vector<2x10x128xbf16>
    %cst_68 = arith.constant 0.000000e+00 : bf16
    %249 = vector.broadcast %cst_68 : bf16 to vector<2x2x128xbf16>
    %250 = tpu.concatenate %249, %248, %249 in 1 : vector<2x2x128xbf16>, vector<2x10x128xbf16>, vector<2x2x128xbf16> -> vector<2x14x128xbf16>
    %251 = vector.extract_strided_slice %250 {offsets = [0, 0, 0], sizes = [2, 12, 128], strides = [1, 1, 1]} : vector<2x14x128xbf16> to vector<2x12x128xbf16>
    %252 = vector.shape_cast %251 : vector<2x12x128xbf16> to vector<24x128xbf16>
    %253 = vector.extract_strided_slice %247 {offsets = [0, 0, 0], sizes = [1, 128, 16], strides = [1, 1, 1]} : vector<3x128x16xbf16> to vector<1x128x16xbf16>
    %254 = vector.shape_cast %253 : vector<1x128x16xbf16> to vector<128x16xbf16>
    %cst_69 = arith.constant dense<0.000000e+00> : vector<24x16xf32>
    %255 = tpu.matmul %252, %254, %cst_69 {dimension_numbers = #tpu.dot_dimension_numbers<[1], [0], [0], [1], [0, 0, 1, 1], [], []>} : vector<24x128xbf16>, vector<128x16xbf16>, vector<24x16xf32> -> vector<24x16xf32>
    %256 = vector.extract_strided_slice %250 {offsets = [0, 1, 0], sizes = [2, 12, 128], strides = [1, 1, 1]} : vector<2x14x128xbf16> to vector<2x12x128xbf16>
    %257 = vector.shape_cast %256 : vector<2x12x128xbf16> to vector<24x128xbf16>
    %258 = vector.extract_strided_slice %247 {offsets = [1, 0, 0], sizes = [1, 128, 16], strides = [1, 1, 1]} : vector<3x128x16xbf16> to vector<1x128x16xbf16>
    %259 = vector.shape_cast %258 : vector<1x128x16xbf16> to vector<128x16xbf16>
    %cst_70 = arith.constant dense<0.000000e+00> : vector<24x16xf32>
    %260 = tpu.matmul %257, %259, %cst_70 {dimension_numbers = #tpu.dot_dimension_numbers<[1], [0], [0], [1], [0, 0, 1, 1], [], []>} : vector<24x128xbf16>, vector<128x16xbf16>, vector<24x16xf32> -> vector<24x16xf32>
    %261 = arith.addf %255, %260 : vector<24x16xf32>
    %262 = vector.extract_strided_slice %250 {offsets = [0, 2, 0], sizes = [2, 12, 128], strides = [1, 1, 1]} : vector<2x14x128xbf16> to vector<2x12x128xbf16>
    %263 = vector.shape_cast %262 : vector<2x12x128xbf16> to vector<24x128xbf16>
    %264 = vector.extract_strided_slice %247 {offsets = [2, 0, 0], sizes = [1, 128, 16], strides = [1, 1, 1]} : vector<3x128x16xbf16> to vector<1x128x16xbf16>
    %265 = vector.shape_cast %264 : vector<1x128x16xbf16> to vector<128x16xbf16>
    %cst_71 = arith.constant dense<0.000000e+00> : vector<24x16xf32>
    %266 = tpu.matmul %263, %265, %cst_71 {dimension_numbers = #tpu.dot_dimension_numbers<[1], [0], [0], [1], [0, 0, 1, 1], [], []>} : vector<24x128xbf16>, vector<128x16xbf16>, vector<24x16xf32> -> vector<24x16xf32>
    %267 = arith.addf %261, %266 : vector<24x16xf32>
    %268 = vector.shape_cast %267 : vector<24x16xf32> to vector<2x12x16xf32>
    %269 = vector.extract_strided_slice %0 {offsets = [8, 0], sizes = [1, 16], strides = [1, 1]} : vector<22x128xf32> to vector<1x16xf32>
    %270 = vector.shape_cast %269 : vector<1x16xf32> to vector<16xf32>
    %271 = vector.shape_cast %270 : vector<16xf32> to vector<1x1x16xf32>
    %272 = vector.broadcast %271 : vector<1x1x16xf32> to vector<2x12x16xf32>
    %273 = arith.addf %268, %272 : vector<2x12x16xf32>
    %cst_72 = arith.constant 0.000000e+00 : f32
    %274 = vector.broadcast %cst_72 : f32 to vector<2x12x16xf32>
    %275 = arith.maximumf %273, %274 : vector<2x12x16xf32>
    %c0_73 = arith.constant 0 : index
    %c0_74 = arith.constant 0 : index
    %c0_75 = arith.constant 0 : index
    %276 = vector.load %arg10[%c0_73, %c0_74, %c0_75] : memref<3x16x8xbf16, #tpu.memory_space<vmem>>, vector<3x16x8xbf16>
    %277 = arith.truncf %275 : vector<2x12x16xf32> to vector<2x12x16xbf16>
    %cst_76 = arith.constant 0.000000e+00 : bf16
    %278 = vector.broadcast %cst_76 : bf16 to vector<2x2x16xbf16>
    %279 = tpu.concatenate %278, %277, %278 in 1 : vector<2x2x16xbf16>, vector<2x12x16xbf16>, vector<2x2x16xbf16> -> vector<2x16x16xbf16>
    %280 = vector.extract_strided_slice %279 {offsets = [0, 0, 0], sizes = [2, 14, 16], strides = [1, 1, 1]} : vector<2x16x16xbf16> to vector<2x14x16xbf16>
    %281 = vector.shape_cast %280 : vector<2x14x16xbf16> to vector<28x16xbf16>
    %282 = vector.extract_strided_slice %276 {offsets = [0, 0, 0], sizes = [1, 16, 8], strides = [1, 1, 1]} : vector<3x16x8xbf16> to vector<1x16x8xbf16>
    %283 = vector.shape_cast %282 : vector<1x16x8xbf16> to vector<16x8xbf16>
    %cst_77 = arith.constant dense<0.000000e+00> : vector<28x8xf32>
    %284 = tpu.matmul %281, %283, %cst_77 {dimension_numbers = #tpu.dot_dimension_numbers<[1], [0], [0], [1], [0, 0, 1, 1], [], []>} : vector<28x16xbf16>, vector<16x8xbf16>, vector<28x8xf32> -> vector<28x8xf32>
    %285 = vector.extract_strided_slice %279 {offsets = [0, 1, 0], sizes = [2, 14, 16], strides = [1, 1, 1]} : vector<2x16x16xbf16> to vector<2x14x16xbf16>
    %286 = vector.shape_cast %285 : vector<2x14x16xbf16> to vector<28x16xbf16>
    %287 = vector.extract_strided_slice %276 {offsets = [1, 0, 0], sizes = [1, 16, 8], strides = [1, 1, 1]} : vector<3x16x8xbf16> to vector<1x16x8xbf16>
    %288 = vector.shape_cast %287 : vector<1x16x8xbf16> to vector<16x8xbf16>
    %cst_78 = arith.constant dense<0.000000e+00> : vector<28x8xf32>
    %289 = tpu.matmul %286, %288, %cst_78 {dimension_numbers = #tpu.dot_dimension_numbers<[1], [0], [0], [1], [0, 0, 1, 1], [], []>} : vector<28x16xbf16>, vector<16x8xbf16>, vector<28x8xf32> -> vector<28x8xf32>
    %290 = arith.addf %284, %289 : vector<28x8xf32>
    %291 = vector.extract_strided_slice %279 {offsets = [0, 2, 0], sizes = [2, 14, 16], strides = [1, 1, 1]} : vector<2x16x16xbf16> to vector<2x14x16xbf16>
    %292 = vector.shape_cast %291 : vector<2x14x16xbf16> to vector<28x16xbf16>
    %293 = vector.extract_strided_slice %276 {offsets = [2, 0, 0], sizes = [1, 16, 8], strides = [1, 1, 1]} : vector<3x16x8xbf16> to vector<1x16x8xbf16>
    %294 = vector.shape_cast %293 : vector<1x16x8xbf16> to vector<16x8xbf16>
    %cst_79 = arith.constant dense<0.000000e+00> : vector<28x8xf32>
    %295 = tpu.matmul %292, %294, %cst_79 {dimension_numbers = #tpu.dot_dimension_numbers<[1], [0], [0], [1], [0, 0, 1, 1], [], []>} : vector<28x16xbf16>, vector<16x8xbf16>, vector<28x8xf32> -> vector<28x8xf32>
    %296 = arith.addf %290, %295 : vector<28x8xf32>
    %297 = vector.shape_cast %296 : vector<28x8xf32> to vector<2x14x8xf32>
    %298 = vector.extract_strided_slice %0 {offsets = [9, 0], sizes = [1, 8], strides = [1, 1]} : vector<22x128xf32> to vector<1x8xf32>
    %299 = vector.shape_cast %298 : vector<1x8xf32> to vector<8xf32>
    %300 = vector.shape_cast %299 : vector<8xf32> to vector<1x1x8xf32>
    %301 = vector.broadcast %300 : vector<1x1x8xf32> to vector<2x14x8xf32>
    %302 = arith.addf %297, %301 : vector<2x14x8xf32>
    %cst_80 = arith.constant 0.000000e+00 : f32
    %303 = vector.broadcast %cst_80 : f32 to vector<2x14x8xf32>
    %304 = arith.maximumf %302, %303 : vector<2x14x8xf32>
    %c0_81 = arith.constant 0 : index
    %c0_82 = arith.constant 0 : index
    %c0_83 = arith.constant 0 : index
    %305 = vector.load %arg11[%c0_81, %c0_82, %c0_83] : memref<3x8x128xbf16, #tpu.memory_space<vmem>>, vector<3x8x128xbf16>
    %306 = arith.truncf %304 : vector<2x14x8xf32> to vector<2x14x8xbf16>
    %cst_84 = arith.constant 0.000000e+00 : bf16
    %307 = vector.broadcast %cst_84 : bf16 to vector<2x2x8xbf16>
    %308 = tpu.concatenate %307, %306, %307 in 1 : vector<2x2x8xbf16>, vector<2x14x8xbf16>, vector<2x2x8xbf16> -> vector<2x18x8xbf16>
    %309 = vector.extract_strided_slice %308 {offsets = [0, 0, 0], sizes = [2, 16, 8], strides = [1, 1, 1]} : vector<2x18x8xbf16> to vector<2x16x8xbf16>
    %310 = vector.shape_cast %309 : vector<2x16x8xbf16> to vector<32x8xbf16>
    %311 = vector.extract_strided_slice %305 {offsets = [0, 0, 0], sizes = [1, 8, 128], strides = [1, 1, 1]} : vector<3x8x128xbf16> to vector<1x8x128xbf16>
    %312 = vector.shape_cast %311 : vector<1x8x128xbf16> to vector<8x128xbf16>
    %cst_85 = arith.constant dense<0.000000e+00> : vector<32x128xf32>
    %313 = tpu.matmul %310, %312, %cst_85 {dimension_numbers = #tpu.dot_dimension_numbers<[1], [0], [0], [1], [0, 0, 1, 1], [], []>} : vector<32x8xbf16>, vector<8x128xbf16>, vector<32x128xf32> -> vector<32x128xf32>
    %314 = vector.extract_strided_slice %308 {offsets = [0, 1, 0], sizes = [2, 16, 8], strides = [1, 1, 1]} : vector<2x18x8xbf16> to vector<2x16x8xbf16>
    %315 = vector.shape_cast %314 : vector<2x16x8xbf16> to vector<32x8xbf16>
    %316 = vector.extract_strided_slice %305 {offsets = [1, 0, 0], sizes = [1, 8, 128], strides = [1, 1, 1]} : vector<3x8x128xbf16> to vector<1x8x128xbf16>
    %317 = vector.shape_cast %316 : vector<1x8x128xbf16> to vector<8x128xbf16>
    %cst_86 = arith.constant dense<0.000000e+00> : vector<32x128xf32>
    %318 = tpu.matmul %315, %317, %cst_86 {dimension_numbers = #tpu.dot_dimension_numbers<[1], [0], [0], [1], [0, 0, 1, 1], [], []>} : vector<32x8xbf16>, vector<8x128xbf16>, vector<32x128xf32> -> vector<32x128xf32>
    %319 = arith.addf %313, %318 : vector<32x128xf32>
    %320 = vector.extract_strided_slice %308 {offsets = [0, 2, 0], sizes = [2, 16, 8], strides = [1, 1, 1]} : vector<2x18x8xbf16> to vector<2x16x8xbf16>
    %321 = vector.shape_cast %320 : vector<2x16x8xbf16> to vector<32x8xbf16>
    %322 = vector.extract_strided_slice %305 {offsets = [2, 0, 0], sizes = [1, 8, 128], strides = [1, 1, 1]} : vector<3x8x128xbf16> to vector<1x8x128xbf16>
    %323 = vector.shape_cast %322 : vector<1x8x128xbf16> to vector<8x128xbf16>
    %cst_87 = arith.constant dense<0.000000e+00> : vector<32x128xf32>
    %324 = tpu.matmul %321, %323, %cst_87 {dimension_numbers = #tpu.dot_dimension_numbers<[1], [0], [0], [1], [0, 0, 1, 1], [], []>} : vector<32x8xbf16>, vector<8x128xbf16>, vector<32x128xf32> -> vector<32x128xf32>
    %325 = arith.addf %319, %324 : vector<32x128xf32>
    %326 = vector.shape_cast %325 : vector<32x128xf32> to vector<2x16x128xf32>
    %327 = vector.extract_strided_slice %0 {offsets = [10, 0], sizes = [1, 128], strides = [1, 1]} : vector<22x128xf32> to vector<1x128xf32>
    %328 = vector.shape_cast %327 : vector<1x128xf32> to vector<128xf32>
    %329 = vector.shape_cast %328 : vector<128xf32> to vector<1x1x128xf32>
    %330 = vector.broadcast %329 : vector<1x1x128xf32> to vector<2x16x128xf32>
    %331 = arith.addf %326, %330 : vector<2x16x128xf32>
    %cst_88 = arith.constant 0.000000e+00 : f32
    %332 = vector.broadcast %cst_88 : f32 to vector<2x16x128xf32>
    %333 = arith.maximumf %331, %332 : vector<2x16x128xf32>
    %334 = vector.shape_cast %333 : vector<2x16x128xf32> to vector<32x128xf32>
    %335 = arith.truncf %334 : vector<32x128xf32> to vector<32x128xbf16>
    %c0_89 = arith.constant 0 : index
    %c0_90 = arith.constant 0 : index
    %336 = vector.load %arg12[%c0_89, %c0_90] : memref<128x128xbf16, #tpu.memory_space<vmem>>, vector<128x128xbf16>
    %cst_91 = arith.constant dense<0.000000e+00> : vector<32x128xf32>
    %337 = tpu.matmul %335, %336, %cst_91 {dimension_numbers = #tpu.dot_dimension_numbers<[1], [0], [0], [1], [0, 0, 1, 1], [], []>} : vector<32x128xbf16>, vector<128x128xbf16>, vector<32x128xf32> -> vector<32x128xf32>
    %338 = vector.extract_strided_slice %0 {offsets = [11, 0], sizes = [1, 128], strides = [1, 1]} : vector<22x128xf32> to vector<1x128xf32>
    %339 = vector.shape_cast %338 : vector<1x128xf32> to vector<128xf32>
    %340 = vector.shape_cast %339 : vector<128xf32> to vector<1x128xf32>
    %341 = vector.broadcast %340 : vector<1x128xf32> to vector<32x128xf32>
    %342 = arith.addf %337, %341 : vector<32x128xf32>
    %343 = vector.shape_cast %342 : vector<32x128xf32> to vector<2x16x128xf32>
    %c0_92 = arith.constant 0 : index
    %c0_93 = arith.constant 0 : index
    %c0_94 = arith.constant 0 : index
    %344 = vector.load %arg15[%c0_92, %c0_93, %c0_94] : memref<2x16x128xf32, #tpu.memory_space<vmem>>, vector<2x16x128xf32>
    tpu.vector_store %arg15[%c0_92, %c0_93, %c0_94], %343 {strides = array<i32>} : memref<2x16x128xf32, #tpu.memory_space<vmem>>, vector<2x16x128xf32>,
    return
  }
  func.func @transform_0(%arg0: i32) -> (i32, i32, i32) {
    %c0_i32 = arith.constant 0 : i32
    %c0_i32_0 = arith.constant 0 : i32
    %c0_i32_1 = arith.constant 0 : i32
    return %arg0, %c0_i32, %c0_i32_0 : i32, i32, i32
  }
  func.func @transform_1(%arg0: i32) -> (i32, i32, i32) {
    %c0_i32 = arith.constant 0 : i32
    %c0_i32_0 = arith.constant 0 : i32
    %c0_i32_1 = arith.constant 0 : i32
    return %arg0, %c0_i32, %c0_i32_0 : i32, i32, i32
  }
  func.func @transform_2(%arg0: i32) -> (i32, i32) {
    %c0_i32 = arith.constant 0 : i32
    %c0_i32_0 = arith.constant 0 : i32
    %c0_i32_1 = arith.constant 0 : i32
    return %c0_i32, %c0_i32_0 : i32, i32
  }
  func.func @transform_3(%arg0: i32) -> (i32, i32, i32, i32) {
    %c0_i32 = arith.constant 0 : i32
    %c0_i32_0 = arith.constant 0 : i32
    %c0_i32_1 = arith.constant 0 : i32
    %c0_i32_2 = arith.constant 0 : i32
    %c0_i32_3 = arith.constant 0 : i32
    return %c0_i32, %c0_i32_0, %c0_i32_1, %c0_i32_2 : i32, i32, i32, i32
  }
  func.func @transform_4(%arg0: i32) -> (i32, i32, i32, i32) {
    %c0_i32 = arith.constant 0 : i32
    %c0_i32_0 = arith.constant 0 : i32
    %c0_i32_1 = arith.constant 0 : i32
    %c0_i32_2 = arith.constant 0 : i32
    %c0_i32_3 = arith.constant 0 : i32
    return %c0_i32, %c0_i32_0, %c0_i32_1, %c0_i32_2 : i32, i32, i32, i32
  }
  func.func @transform_5(%arg0: i32) -> (i32, i32, i32, i32) {
    %c0_i32 = arith.constant 0 : i32
    %c0_i32_0 = arith.constant 0 : i32
    %c0_i32_1 = arith.constant 0 : i32
    %c0_i32_2 = arith.constant 0 : i32
    %c0_i32_3 = arith.constant 0 : i32
    return %c0_i32, %c0_i32_0, %c0_i32_1, %c0_i32_2 : i32, i32, i32, i32
  }
  func.func @transform_6(%arg0: i32) -> (i32, i32, i32) {
    %c0_i32 = arith.constant 0 : i32
    %c0_i32_0 = arith.constant 0 : i32
    %c0_i32_1 = arith.constant 0 : i32
    %c0_i32_2 = arith.constant 0 : i32
    return %c0_i32, %c0_i32_0, %c0_i32_1 : i32, i32, i32
  }
  func.func @transform_7(%arg0: i32) -> (i32, i32) {
    %c0_i32 = arith.constant 0 : i32
    %c0_i32_0 = arith.constant 0 : i32
    %c0_i32_1 = arith.constant 0 : i32
    return %c0_i32, %c0_i32_0 : i32, i32
  }
  func.func @transform_8(%arg0: i32) -> (i32, i32, i32) {
    %c0_i32 = arith.constant 0 : i32
    %c0_i32_0 = arith.constant 0 : i32
    %c0_i32_1 = arith.constant 0 : i32
    %c0_i32_2 = arith.constant 0 : i32
    return %c0_i32, %c0_i32_0, %c0_i32_1 : i32, i32, i32
  }
  func.func @transform_9(%arg0: i32) -> (i32, i32, i32) {
    %c0_i32 = arith.constant 0 : i32
    %c0_i32_0 = arith.constant 0 : i32
    %c0_i32_1 = arith.constant 0 : i32
    %c0_i32_2 = arith.constant 0 : i32
    return %c0_i32, %c0_i32_0, %c0_i32_1 : i32, i32, i32
  }
  func.func @transform_10(%arg0: i32) -> (i32, i32, i32) {
    %c0_i32 = arith.constant 0 : i32
    %c0_i32_0 = arith.constant 0 : i32
    %c0_i32_1 = arith.constant 0 : i32
    %c0_i32_2 = arith.constant 0 : i32
    return %c0_i32, %c0_i32_0, %c0_i32_1 : i32, i32, i32
  }
  func.func @transform_11(%arg0: i32) -> (i32, i32) {
    %c0_i32 = arith.constant 0 : i32
    %c0_i32_0 = arith.constant 0 : i32
    %c0_i32_1 = arith.constant 0 : i32
    return %c0_i32, %c0_i32_0 : i32, i32
  }
  func.func @transform_12(%arg0: i32) -> (i32, i32) {
    %c0_i32 = arith.constant 0 : i32
    %c0_i32_0 = arith.constant 0 : i32
    %c0_i32_1 = arith.constant 0 : i32
    return %c0_i32, %c0_i32_0 : i32, i32
  }
  func.func @transform_13(%arg0: i32) -> (i32, i32, i32) {
    %c0_i32 = arith.constant 0 : i32
    %c0_i32_0 = arith.constant 0 : i32
    %c0_i32_1 = arith.constant 0 : i32
    return %arg0, %c0_i32, %c0_i32_0 : i32, i32, i32
  }
  func.func @transform_14(%arg0: i32) -> (i32, i32, i32) {
    %c0_i32 = arith.constant 0 : i32
    %c0_i32_0 = arith.constant 0 : i32
    %c0_i32_1 = arith.constant 0 : i32
    return %arg0, %c0_i32, %c0_i32_0 : i32, i32, i32
  }
}

</mosaic_0001>

<bundles_post_ra>
// kernel: net_forward.1
= control target key start
LH: loop header
LB: loop body
LE: loop exit
PB: predicated region body
PF: predicated region fallthrough
CT: control target
= control target key end

     0   :  { %v5031_v2 = vmov 0   ;;  %s5982_s0 = inlined_call_operand.vmem [shape: s32[2,16,1], index: 0, kind: input, shape index: {}]   ;;  %s5983_s1 = inlined_call_operand.vmem [shape: f32[2,1,24], index: 1, kind: input, shape index: {}]   ;;  %s5984_s2 = inlined_call_operand.vmem [shape: f32[48,32], index: 2, kind: input, shape index: {}]   ;;  %s5985_s3 = inlined_call_operand.vmem [shape: bf16[2,3,32,8], index: 3, kind: input, shape index: {}]   ;;  %s5986_s4 = inlined_call_operand.vmem [shape: bf16[2,3,8,16], index: 4, kind: input, shape index: {}]   ;;  %s5987_s5 = inlined_call_operand.vmem [shape: bf16[2,3,16,24], index: 5, kind: input, shape index: {}]   ;;  %s5988_s6 = inlined_call_operand.vmem [shape: bf16[2,24,24], index: 6, kind: input, shape index: {}]   ;;  %s5989_s7 = inlined_call_operand.vmem [shape: bf16[24,1280], index: 7, kind: input, shape index: {}]   ;;  %s5990_s8 = inlined_call_operand.vmem [shape: bf16[3,128,16], index: 8, kind: input, shape index: {}]   ;;  %s5991_s9 = inlined_call_operand.vmem [shape: bf16[3,16,8], index: 9, kind: input, shape index: {}]   ;;  %s5992_s10 = inlined_call_operand.vmem [shape: bf16[3,8,128], index: 10, kind: input, shape index: {}]   ;;  %s5993_s11 = inlined_call_operand.vmem [shape: bf16[128,128], index: 11, kind: input, shape index: {}]   ;;  %s5994_s12 = inlined_call_operand.vmem [shape: f32[22,128], index: 12, kind: input, shape index: {}]   ;;  %s5995_s13 = inlined_call_operand.vmem [shape: f32[2,3,24], index: 13, kind: output, shape index: {0}]   ;;  %s5996_s14 = inlined_call_operand.hbm [shape: f32[2,16,128], index: 14, kind: output, shape index: {1}]  }
   0x1   :  { %v53_v0 = vld [vmem:[%s5982_s0 + $0x10] sm:$0xff]  ;;  %v51_v1 = vld [vmem:[%s5982_s0] sm:$0xff]  ;;  %4873 = vset.pattern.permute.xlu1 %v5031_v2  ;;  %4872 = vset.pattern.permute.xlu0 %v5031_v2  ;;  %v54_v3 = vld [vmem:[%s5982_s0 + $0x18] sm:$0xff] }
   0x2   :  { %v81_v4 = vld [vmem:[%s5984_s2] sm:$0xff]  ;;  %v82_v5 = vld [vmem:[%s5984_s2 + $0x8] sm:$0xff]  ;;  %64 = vperm.xlu1 %4873, %v53_v0   ;;  %58 = vperm.xlu0 %4872, %v51_v1   ;;  %v83_v8 = vld [vmem:[%s5984_s2 + $0x10] sm:$0xff] }
   0x3   :  { %v52_v6 = vld [vmem:[%s5982_s0 + $0x8] sm:$0xff]  ;;  %v4770_v7 = vpack.c.bf16 %v82_v5, %v81_v4  ;;  %v84_v9 = vld [vmem:[%s5984_s2 + $0x18] sm:$0xff]  ;;  %v85_v11 = vld [vmem:[%s5984_s2 + $0x20] sm:$0xff] }
   0x4   :  { %v4774_v10 = vpack.c.bf16 %v84_v9, %v83_v8  ;;  %v86_v12 = vld [vmem:[%s5984_s2 + $0x28] sm:$0xff] }
   0x5   :  { %4771 = vmatprep.subr.bf16.mxu0 %v4770_v7  ;;  %v4778_v13 = vpack.c.bf16 %v86_v12, %v85_v11 }
   0x6   :  { %4773 = vmatpush3.bf16.msra.mxu0 %v4770_v7  ;;  %67 = vperm.xlu1 %4873, %v54_v3  }
   0x7   :  { %61 = vperm.xlu0 %4872, %v52_v6   ;;  %4775 = vmatprep.subr.bf16.mxu0 %v4774_v10 }
   0xa   :  { %4777 = vmatpush3.bf16.msra.mxu0 %v4774_v10 }
   0xb   :  { %4779 = vmatprep.subr.bf16.mxu0 %v4778_v13 }
   0xe   :  { %4781 = vmatpush3.bf16.msra.mxu0 %v4778_v13 }
   0xf   :  { %20 = vsyncpa [#allocation3], 0  ;;  %v55_v14 = vlaneseq  ;;  %vm87_vm0 = vcmask 392192   ;;  %v5032_v18 = vmov 0.0   ;;  %v4874_v25 = vld [vmem:[%s5985_s3] sm:$0xff]   ;;  %v4875_v26 = vld [vmem:[%s5985_s3 + $0x8] sm:$0xff]  }
  0x10   :  { %4526 = vmatprep.subr.bf16.mxu1 %v4874_v25  ;;  %v4876_v27 = vld [vmem:[%s5985_s3 + $0x10] sm:$0xff]   ;;  %v4877_v28 = vld [vmem:[%s5985_s3 + $0x18] sm:$0xff]   ;;  %v4878_v29 = vld [vmem:[%s5985_s3 + $0x20] sm:$0xff]   ;;  %vm229_vm5 = vcmask 1040384   ;;  %vm230_vm6 = vsmask.f32 256 }
  0x11   :  { %v56_v15 = vand.u32 127, %v55_v14  ;;  %4527 = vmatpush3.bf16.msra.mxu1 %v4874_v25  ;;  %4518 = vmatprep.subr.bf16.mxu0 %v4876_v27  ;;  %v4879_v30 = vld [vmem:[%s5985_s3 + $0x40] sm:$0xff]   ;;  %vm5172_vm7 = vmand %vm229_vm5, %vm230_vm6  ;;  %vm273_vm8 = vcmask 261120   ;;  %vm398_vm9 = vcmask 1046528   ;;  %v4880_v55 = vld [vmem:[%s5985_s3 + $0x28] sm:$0xff]   ;;  %vm768_vm11 = vcmask 1043456  }
  0x12   :  { %4528 = vmatprep.subr.bf16.mxu1 %v4875_v26  ;;  %vm236_vm10 = vsmask.f32 7424  ;;  %v4881_v4 = vld [vmem:[%s5985_s3 + $0x48] sm:$0xff]   ;;  %v4882_v8 = vld [vmem:[%s5985_s3 + $0x30] sm:$0xff]   ;;  %v4883_v10 = vld [vmem:[%s5985_s3 + $0x38] sm:$0xff]   ;;  %vm761_vm12 = vcmask 64512  }
  0x13   :  { %v4884_v11 = vld [vmem:[%s5985_s3 + $0x50] sm:$0xff]   ;;  %v4885_v12 = vld [vmem:[%s5985_s3 + $0x58] sm:$0xff]   ;;  %vm1219_vm13 = vcmask 130048   ;;  %vm5033_vm14 = vmmov 0   ;;  %vm1628_vm15 = vcmask 195584  }
  0x14   :  { %v711_v13 = vld [vmem:[%s5986_s4 + $0x10] sm:$0xf] }
  0x15   :  { %4529 = vmatpush3.bf16.msra.mxu1 %v4875_v26 }
  0x16   :  { %4534 = vmatprep.subr.bf16.mxu1 %v4878_v29 }
  0x81   :  { %v65_v16 = vpop.permute.xlu1 %64  ;;  %v59_v17 = vpop.permute.xlu0 %58 }
  0x82   :  { %vm69_vm1 = vcmp.eq.s32.totalorder %v59_v17, %v56_v15  ;;  %vm71_vm2 = vcmp.eq.s32.totalorder %v65_v16, %v56_v15  ;;  %v958_v16 = vsel %vm768_vm11, %v711_v13, 0 }
  0x83   :  { %v4190_v19 = vsel %vm69_vm1, 1.0, %v5032_v18  ;;  %v4192_v22 = vsel %vm71_vm2, 1.0, %v5032_v18  ;;  %vm1881_vm1 = vcmask 1041408   ;;  %vm1884_vm2 = vcmask 190464  }
  0x84   :  { %4512 = vmatprep.mubr.msk.f32.mxu0 %vm87_vm0, %v4190_v19  ;;  %v5231_v19 = vld [vmem:[%s5986_s4 + $0xc] sm:$0xf] }
  0x85   :  { %v68_v20 = vpop.permute.xlu1 %67 }
  0x86   :  { %v62_v21 = vpop.permute.xlu0 %61  ;;  %vm72_vm4 = vcmp.eq.s32.totalorder %v68_v20, %v56_v15  ;;  %v5238_v20 = vld [vmem:[%s5986_s4] sm:$0xf] }
  0x87   :  { %vm70_vm3 = vcmp.eq.s32.totalorder %v62_v21, %v56_v15  ;;  %v4193_v24 = vsel %vm72_vm4, 1.0, %v5032_v18  ;;  %v708_v15 = vld [vmem:[%s5986_s4 + $0x4] sm:$0xf]  ;;  %vm2396_vm4 = vsmask.f32 1280 }
  0x88   :  { %v4191_v23 = vsel %vm70_vm3, 1.0, %v5032_v18  ;;  %v770_v17 = vsel %vm768_vm11, %v708_v15, 0  ;;  %vm2357_vm3 = vcmask 1045504  }
  0x89   :  { %4513 = vmatmul.mubr.msk.f32.vlgmr.msra.gmra.mrb[0].mxu0 %vm87_vm0, %v4191_v23 }
  0x8a   :  { %4515 = vmatprep.mubr.msk.f32.mxu0 %vm87_vm0, %v4192_v22  ;;  %4519 = vmatpush3.bf16.msra.mxu0 %v4876_v27 }
  0x8b   :  { %4520 = vmatprep.subr.bf16.mxu0 %v4877_v28 }
  0x8d   :  { %4516 = vmatmul.mubr.msk.f32.gmra.mrb[2].mxu0 %vm87_vm0, %v4193_v24  ;;  %vm1660_vm0 = vcmask 1041409  }
  0x8e   :  { %4521 = vmatpush3.bf16.msra.mxu0 %v4877_v28 }
  0x8f   :  { %4542 = vmatprep.subr.bf16.mxu0 %v4879_v30 }
 0x15c   :  { %v4514_v31 = vpop.f32.mrb[0].mxu0 }
 0x15d   :  { %v166_v32 = vpop.f32.mrb[1].mxu0 }
 0x15e   :  { %v209_v33 = vpack.c.bf16 %v4514_v31, %v166_v32 }
 0x160   :  { %v212_v34 = vshrl.u32 %v209_v33, 16  ;;  %v4517_v35 = vpop.f32.mrb[2].mxu0  ;;  %v215_v39 = vshll.u32 %v209_v33, 16  ;;  %v5243_v33 = vshrl.u32 %v55_v14, 7 }
 0x161   :  { %v176_v37 = vpop.f32.mrb[3].mxu0 }
 0x162   :  { %v214_v38 = vrot.slane %v212_v34, 7  ;;  %v210_v40 = vpack.c.bf16 %v4517_v35, %v176_v37  ;;  %v673_v34 = vsub.s32 1, %v5243_v33  ;;  %v5249_v35 = vld [vmem:[%s5994_s12] sm:$0xff] }
 0x164   :  { %v217_v41 = vor.u32 %v215_v39, %v214_v38  ;;  %v234_v42 = vsel %vm5172_vm7, %v214_v38, 0  ;;  %v219_v43 = vshrl.u32 %v210_v40, 16  ;;  %v222_v46 = vshll.u32 %v210_v40, 16 }
 0x165   :  { %v245_v44 = vshll.u32 %v234_v42, 16  ;;  %v400_v52 = vrot.slane %v234_v42, 1  ;;  %v674_v37 = vrot.slane %v5249_v35, %v673_v34 }
 0x166   :  { %v221_v45 = vrot.slane %v219_v43, 7  ;;  %v232_v47 = vsel %vm5172_vm7, 0, %v217_v41 }
 0x167   :  { %4530 = vmatprep.mubr.msk.bf16.mxu1 %vm273_vm8, %v232_v47  ;;  %v399_v48 = vrot.slane %v232_v47, 1  ;;  %v240_v49 = vshll.u32 %v232_v47, 16  ;;  %v238_v53 = vshrl.u32 %v232_v47, 16  ;;  %v247_v56 = vrot.slane %v245_v44, 1 }
 0x168   :  { %v224_v50 = vor.u32 %v222_v46, %v221_v45  ;;  %v235_v51 = vsel %vm5172_vm7, %v221_v45, 0 }
 0x169   :  { %v242_v54 = vrot.slane %v240_v49, 1  ;;  %v257_v58 = vshll.u32 %v235_v51, 16  ;;  %v401_v60 = vsel %vm398_vm9, %v399_v48, %v400_v52  ;;  %v403_v7 = vrot.slane %v235_v51, 1 }
 0x16a   :  { %v233_v57 = vsel %vm5172_vm7, 0, %v224_v50 }
 0x16b   :  { %v252_v59 = vshll.u32 %v233_v57, 16  ;;  %4531 = vmatmul.mubr.msk.bf16.vlgmr.msra.gmra.mrb[0].mxu1 %vm273_vm8, %v233_v57  ;;  %v243_v61 = vor.u32 %v242_v54, %v238_v53  ;;  %v250_v62 = vshrl.u32 %v233_v57, 16  ;;  %v259_v1 = vrot.slane %v257_v58, 1 }
 0x16c   :  { %4538 = vmatprep.mubr.msk.bf16.mxu1 %vm273_vm8, %v401_v60  ;;  %4535 = vmatpush3.bf16.msra.mxu1 %v4878_v29  ;;  %v402_v6 = vrot.slane %v233_v57, 1 }
 0x16d   :  { %v254_v63 = vrot.slane %v252_v59, 1  ;;  %v248_v0 = vsel %vm236_vm10, %v243_v61, %v247_v56  ;;  %4536 = vmatprep.subr.bf16.mxu1 %v4880_v55  ;;  %v5255_v56 = vsub.s32 0, %v5243_v33 }
 0x16e   :  { %4522 = vmatprep.mubr.msk.bf16.mxu0 %vm273_vm8, %v248_v0  ;;  %v404_v9 = vsel %vm398_vm9, %v402_v6, %v403_v7 }
 0x16f   :  { %v255_v3 = vor.u32 %v254_v63, %v250_v62  ;;  %v479_v58 = vrot.slane %v5249_v35, %v5255_v56 }
 0x170   :  { %4537 = vmatpush3.bf16.msra.mxu1 %v4880_v55 }
 0x171   :  { %v260_v5 = vsel %vm236_vm10, %v255_v3, %v259_v1  ;;  %4854 = vmatprep.subr.msk.bf16.mxu1 %vm768_vm11, %v708_v15 }
 0x172   :  { %4523 = vmatmul.mubr.msk.bf16.vlgmr.msra.gmra.mrb[4].mxu0 %vm273_vm8, %v260_v5 }
 0x173   :  { %4543 = vmatpush3.bf16.msra.mxu0 %v4879_v30  ;;  %4546 = vmatprep.mubr.msk.bf16.mxu0 %vm273_vm8, %v248_v0 }
 0x174   :  { %4544 = vmatprep.subr.bf16.mxu0 %v4881_v4 }
 0x177   :  { %4545 = vmatpush3.bf16.msra.mxu0 %v4881_v4  ;;  %4539 = vmatmul.mubr.msk.bf16.vlgmr.msra.gmra.mrb[0].mxu1 %vm273_vm8, %v404_v9 }
 0x178   :  { %4550 = vmatprep.subr.bf16.mxu0 %v4882_v8  ;;  %4567 = vmatpush3.bf16.msra.mxu1 %v770_v17 }
 0x179   :  { %4855 = vmatprep.subr.msk.bf16.mxu1 %vm768_vm11, %v5238_v20 }
 0x17a   :  { %4547 = vmatmul.mubr.msk.bf16.vlgmr.msra.gmra.mrb[8].mxu0 %vm273_vm8, %v260_v5 }
 0x17b   :  { %4551 = vmatpush3.bf16.msra.mxu0 %v4882_v8  ;;  %4554 = vmatprep.mubr.msk.bf16.mxu0 %vm273_vm8, %v232_v47 }
 0x17c   :  { %4552 = vmatprep.subr.bf16.mxu0 %v4883_v10 }
 0x17f   :  { %4553 = vmatpush3.bf16.msra.mxu0 %v4883_v10 }
 0x180   :  { %4558 = vmatprep.subr.bf16.mxu0 %v4884_v11 }
 0x186   :  { %4555 = vmatmul.mubr.msk.bf16.vlgmr.msra.gmra.mrb[8].mxu0 %vm273_vm8, %v233_v57 }
 0x187   :  { %4559 = vmatpush3.bf16.msra.mxu0 %v4884_v11  ;;  %4562 = vmatprep.mubr.msk.bf16.mxu0 %vm273_vm8, %v401_v60 }
 0x188   :  { %4560 = vmatprep.subr.bf16.mxu0 %v4885_v12 }
 0x18b   :  { %4561 = vmatpush3.bf16.msra.mxu0 %v4885_v12 }
 0x18c   :  { %4857 = vmatprep.subr.msk.bf16.mxu0 %vm768_vm11, %v711_v13 }
 0x192   :  { %4563 = vmatmul.mubr.msk.bf16.vlgmr.msra.gmra.mrb[8].mxu0 %vm273_vm8, %v404_v9  ;;  %vm2399_vm8 = vsmask.f32 5392 }
 0x193   :  { %4585 = vmatpush3.bf16.msra.mxu0 %v958_v16 }
 0x194   :  { %4858 = vmatprep.subr.msk.bf16.mxu0 %vm768_vm11, %v5231_v19 }
 0x245   :  { %v4524_v21 = vpop.f32.mrb[4].mxu0 }
 0x246   :  { %v314_v22 = vpop.f32.mrb[5].mxu0 }
 0x247   :  { %v4525_v23 = vpop.f32.mrb[6].mxu0 }
 0x248   :  { %v317_v24 = vpop.f32.mrb[7].mxu0 }
 0x24a   :  { %v4540_v25 = vpop.f32.mrb[0].mxu1 }
 0x24b   :  { %v4782_v26 = vadd.f32 %v4540_v25, %v4524_v21  ;;  %v457_v27 = vpop.f32.mrb[1].mxu1 }
 0x24c   :  { %v4783_v28 = vadd.f32 %v457_v27, %v314_v22  ;;  %v4541_v29 = vpop.f32.mrb[2].mxu1 }
 0x24d   :  { %v4784_v30 = vadd.f32 %v4541_v29, %v4525_v23  ;;  %v460_v31 = vpop.f32.mrb[3].mxu1  ;;  %v482_v59 = vadd.f32 %v4782_v26, %v479_v58 }
 0x24e   :  { %v4785_v32 = vadd.f32 %v460_v31, %v317_v24  ;;  %v480_v61 = vadd.f32 %v4783_v28, %v479_v58 }
 0x24f   :  { %v483_v63 = vadd.f32 %v4784_v30, %v479_v58 }
 0x250   :  { %v481_v3 = vadd.f32 %v4785_v32, %v479_v58  ;;  %v1119_v58 = vsub.s32 3, %v5243_v33 }
 0x265   :  { %v4564_v38 = vpop.f32.mrb[8].mxu0 }
 0x266   :  { %v677_v39 = vadd.f32 %v4564_v38, %v674_v37  ;;  %v652_v40 = vpop.f32.mrb[9].mxu0 }
 0x267   :  { %v675_v41 = vadd.f32 %v674_v37, %v652_v40  ;;  %v4565_v42 = vpop.f32.mrb[10].mxu0 }
 0x268   :  { %v4224_v43 = vmul.f32 -1.442695, %v677_v39  ;;  %v678_v44 = vadd.f32 %v4565_v42, %v674_v37  ;;  %v655_v14 = vpop.f32.mrb[11].mxu0 }
 0x269   :  { %v4222_v45 = vmul.f32 -1.442695, %v675_v41  ;;  %v676_v46 = vadd.f32 %v674_v37, %v655_v14  ;;  %v826_v14 = vsel %vm768_vm11, %v5238_v20, 0 }
 0x26a   :  { %4956 = vpow2.f32 %v4224_v43  ;;  %v4225_v47 = vmul.f32 -1.442695, %v678_v44  ;;  %v1010_v43 = vsel %vm768_vm11, %v5231_v19, 0  ;;  %v709_v19 = vld [vmem:[%s5986_s4 + $0x8] sm:$0xf] }
 0x26b   :  { %4958 = vpow2.f32 %v4222_v45  ;;  %v4223_v48 = vmul.f32 -1.442695, %v676_v46  ;;  %v712_v45 = vld [vmem:[%s5986_s4 + $0x14] sm:$0xf] }
 0x26c   :  { %4960 = vpow2.f32 %v4225_v47  ;;  %v1062_v46 = vsel %vm768_vm11, %v712_v45, 0 }
 0x26d   :  { %4962 = vpow2.f32 %v4223_v48  ;;  %v894_v48 = vsel %vm768_vm11, %v709_v19, 0 }
 0x274   :  { %v4957_v49 = vpop.eup %4956 }
 0x275   :  { %v4959_v50 = vpop.eup %4958  ;;  %v693_v51 = vadd.f32 1.0, %v4957_v49 }
 0x276   :  { %v4961_v52 = vpop.eup %4960  ;;  %v691_v53 = vadd.f32 1.0, %v4959_v50 }
 0x277   :  { %v4963_v54 = vpop.eup %4962  ;;  %4964 = vrcp.f32 %v693_v51  ;;  %v694_v55 = vadd.f32 1.0, %v4961_v52 }
 0x278   :  { %4966 = vrcp.f32 %v691_v53  ;;  %v692_v57 = vadd.f32 1.0, %v4963_v54  ;;  %v4886_v53 = vld [vmem:[%s5987_s5 + $0x20] sm:$0xff]   ;;  %v4887_v54 = vld [vmem:[%s5987_s5 + $0x8] sm:$0xff]  }
 0x279   :  { %4968 = vrcp.f32 %v694_v55  ;;  %v5306_v55 = vld [vmem:[%s5987_s5 + $0x18] sm:$0xff]  }
 0x27a   :  { %4970 = vrcp.f32 %v692_v57  ;;  %v5312_v57 = vld [vmem:[%s5987_s5] sm:$0xff]  }
 0x281   :  { %v4965_v60 = vpop.eup %4964 }
 0x282   :  { %v4967_v62 = vpop.eup %4966  ;;  %v705_v0 = vmul.f32 %v4965_v60, %v482_v59  ;;  %v1120_v59 = vrot.slane %v5249_v35, %v1119_v58 }
 0x283   :  { %v4969_v1 = vpop.eup %4968  ;;  %v703_v4 = vmul.f32 %v4967_v62, %v480_v61 }
 0x284   :  { %v4971_v5 = vpop.eup %4970  ;;  %v706_v6 = vmul.f32 %v4969_v1, %v483_v63 }
 0x285   :  { %v704_v7 = vmul.f32 %v4971_v5, %v481_v3 }
 0x286   :  { %v714_v8 = vpack.c.bf16 %v706_v6, %v705_v0 }
 0x287   :  { %v713_v9 = vpack.c.bf16 %v704_v7, %v703_v4 }
 0x288   :  { %v723_v10 = vshrl.u32 %v714_v8, 16  ;;  %v726_v13 = vshll.u32 %v714_v8, 16 }
 0x289   :  { %v716_v11 = vshrl.u32 %v713_v9, 16  ;;  %v719_v16 = vshll.u32 %v713_v9, 16 }
 0x28a   :  { %v725_v12 = vrot.slane %v723_v10, 7 }
 0x28b   :  { %v718_v15 = vrot.slane %v716_v11, 7 }
 0x28c   :  { %v728_v17 = vor.u32 %v726_v13, %v725_v12  ;;  %v736_v24 = vsel %vm5172_vm7, %v725_v12, 0 }
 0x28d   :  { %v721_v21 = vor.u32 %v719_v16, %v718_v15  ;;  %v735_v22 = vsel %vm5172_vm7, %v718_v15, 0  ;;  %v757_v31 = vshll.u32 %v736_v24, 16  ;;  %v885_v51 = vrot.slane %v736_v24, 1 }
 0x28e   :  { %v734_v23 = vsel %vm5172_vm7, 0, %v728_v17  ;;  %v745_v28 = vshll.u32 %v735_v22, 16  ;;  %v882_v47 = vrot.slane %v735_v22, 1  ;;  %v951_v24 = vsub.s32 2, %v5243_v33 }
 0x28f   :  { %v733_v25 = vsel %vm5172_vm7, 0, %v721_v21  ;;  %v752_v26 = vshll.u32 %v734_v23, 16  ;;  %v750_v29 = vshrl.u32 %v734_v23, 16  ;;  %v759_v41 = vrot.slane %v757_v31, 1 }
 0x290   :  { %v740_v27 = vshll.u32 %v733_v25, 16  ;;  %v738_v32 = vshrl.u32 %v733_v25, 16  ;;  %v747_v40 = vrot.slane %v745_v28, 1  ;;  %v881_v20 = vrot.slane %v733_v25, 1 }
 0x291   :  { %v754_v30 = vrot.slane %v752_v26, 1  ;;  %v884_v50 = vrot.slane %v734_v23, 1  ;;  %v952_v26 = vrot.slane %v5249_v35, %v951_v24 }
 0x292   :  { %v742_v37 = vrot.slane %v740_v27, 1  ;;  %v883_v49 = vsel %vm398_vm9, %v881_v20, %v882_v47 }
 0x293   :  { %v755_v38 = vor.u32 %v754_v30, %v750_v29  ;;  %v886_v52 = vsel %vm398_vm9, %v884_v50, %v885_v51 }
 0x294   :  { %v743_v39 = vor.u32 %v742_v37, %v738_v32 }
 0x295   :  { %v760_v44 = vsel %vm236_vm10, %v755_v38, %v759_v41 }
 0x296   :  { %v748_v42 = vsel %vm236_vm10, %v743_v39, %v747_v40 }
 0x297   :  { %4568 = vmatprep.mubr.msk.bf16.mxu1 %vm761_vm12, %v748_v42  ;;  %4586 = vmatprep.mubr.msk.bf16.mxu0 %vm761_vm12, %v748_v42 }
 0x298   :  { %4569 = vmatmul.mubr.msk.bf16.vlgmr.msra.gmra.mrb[4].mxu1 %vm761_vm12, %v760_v44  ;;  %4587 = vmatmul.mubr.msk.bf16.vlgmr.msra.gmra.mrb[12].mxu0 %vm761_vm12, %v760_v44 }
 0x299   :  { %4591 = vmatpush3.bf16.msra.mxu0 %v1010_v43  ;;  %4574 = vmatprep.mubr.msk.bf16.mxu1 %vm761_vm12, %v733_v25 }
 0x29a   :  { %4592 = vmatprep.mubr.msk.bf16.mxu0 %vm761_vm12, %v733_v25  ;;  %4573 = vmatpush3.bf16.msra.mxu1 %v826_v14 }
 0x29b   :  { %4859 = vmatprep.subr.msk.bf16.mxu0 %vm768_vm11, %v712_v45  ;;  %4856 = vmatprep.subr.msk.bf16.mxu1 %vm768_vm11, %v709_v19 }
 0x2a4   :  { %4575 = vmatmul.mubr.msk.bf16.vlgmr.msra.gmra.mrb[4].mxu1 %vm761_vm12, %v734_v23  ;;  %4593 = vmatmul.mubr.msk.bf16.vlgmr.msra.gmra.mrb[12].mxu0 %vm761_vm12, %v734_v23 }
 0x2a5   :  { %4597 = vmatpush3.bf16.msra.mxu0 %v1062_v46  ;;  %4580 = vmatprep.mubr.msk.bf16.mxu1 %vm761_vm12, %v883_v49 }
 0x2a6   :  { %4598 = vmatprep.mubr.msk.bf16.mxu0 %vm761_vm12, %v883_v49  ;;  %4579 = vmatpush3.bf16.msra.mxu1 %v894_v48 }
 0x2a7   :  { %4620 = vmatprep.subr.bf16.mxu0 %v4886_v53  ;;  %4602 = vmatprep.subr.bf16.mxu1 %v4887_v54 }
 0x2b0   :  { %4581 = vmatmul.mubr.msk.bf16.vlgmr.msra.gmra.mrb[4].mxu1 %vm761_vm12, %v886_v52  ;;  %4599 = vmatmul.mubr.msk.bf16.vlgmr.msra.gmra.mrb[12].mxu0 %vm761_vm12, %v886_v52 }
 0x2b1   :  { %4621 = vmatpush3.bf16.msra.mxu0 %v4886_v53  ;;  %4603 = vmatpush3.bf16.msra.mxu1 %v4887_v54 }
 0x2b2   :  { %4626 = vmatprep.subr.bf16.mxu0 %v5306_v55  ;;  %4608 = vmatprep.subr.bf16.mxu1 %v5312_v57 }
 0x383   :  { %v4582_v60 = vpop.f32.mrb[4].mxu1  ;;  %v4600_v61 = vpop.f32.mrb[12].mxu0 }
 0x384   :  { %v1123_v62 = vadd.f32 %v4600_v61, %v1120_v59  ;;  %v930_v63 = vpop.f32.mrb[5].mxu1  ;;  %v1098_v0 = vpop.f32.mrb[13].mxu0  ;;  %v955_v27 = vadd.f32 %v4582_v60, %v952_v26 }
 0x385   :  { %v1121_v1 = vadd.f32 %v1120_v59, %v1098_v0  ;;  %v4583_v3 = vpop.f32.mrb[6].mxu1  ;;  %v4601_v4 = vpop.f32.mrb[14].mxu0  ;;  %v953_v29 = vadd.f32 %v952_v26, %v930_v63 }
 0x386   :  { %v4240_v5 = vmul.f32 -1.442695, %v1123_v62  ;;  %v1124_v6 = vadd.f32 %v4601_v4, %v1120_v59  ;;  %v933_v7 = vpop.f32.mrb[7].mxu1  ;;  %v1101_v8 = vpop.f32.mrb[15].mxu0  ;;  %v956_v32 = vadd.f32 %v4583_v3, %v952_v26 }
 0x387   :  { %v4238_v9 = vmul.f32 -1.442695, %v1121_v1  ;;  %v1122_v10 = vadd.f32 %v1120_v59, %v1101_v8  ;;  %v954_v39 = vadd.f32 %v952_v26, %v933_v7  ;;  %v4890_v8 = vld [vmem:[%s5987_s5 + $0x28] sm:$0xff]  }
 0x388   :  { %4972 = vpow2.f32 %v4240_v5  ;;  %v4241_v11 = vmul.f32 -1.442695, %v1124_v6 }
 0x389   :  { %4974 = vpow2.f32 %v4238_v9  ;;  %v4239_v12 = vmul.f32 -1.442695, %v1122_v10  ;;  %v4891_v9 = vld [vmem:[%s5987_s5 + $0x10] sm:$0xff]  }
 0x38a   :  { %4976 = vpow2.f32 %v4241_v11 }
 0x38b   :  { %4978 = vpow2.f32 %v4239_v12 }
 0x392   :  { %v4973_v13 = vpop.eup %4972 }
 0x393   :  { %v4975_v15 = vpop.eup %4974  ;;  %v1139_v16 = vadd.f32 1.0, %v4973_v13 }
 0x394   :  { %v4977_v17 = vpop.eup %4976  ;;  %v1137_v21 = vadd.f32 1.0, %v4975_v15  ;;  %v4892_v15 = vld [vmem:[%s5988_s6] sm:$0xff]  }
 0x395   :  { %v4979_v22 = vpop.eup %4978  ;;  %4980 = vrcp.f32 %v1139_v16  ;;  %v1140_v23 = vadd.f32 1.0, %v4977_v17  ;;  %v4893_v16 = vld [vmem:[%s5988_s6 + $0x8] ss:$0 sps:$4 sm:$0xff]  }
 0x396   :  { %4982 = vrcp.f32 %v1137_v21  ;;  %v1138_v25 = vadd.f32 1.0, %v4979_v22  ;;  %v1676_v17 = vsel %vm768_vm11, %v4893_v16, 0  ;;  %v1588_v21 = vsub.s32 5, %v5243_v33 }
 0x397   :  { %4984 = vrcp.f32 %v1140_v23 }
 0x398   :  { %4986 = vrcp.f32 %v1138_v25  ;;  %v1589_v22 = vrot.slane %v5249_v35, %v1588_v21 }
 0x39f   :  { %v4981_v28 = vpop.eup %4980 }
 0x3a0   :  { %v4983_v30 = vpop.eup %4982  ;;  %v1151_v31 = vmul.f32 %v4981_v28, %v955_v27 }
 0x3a1   :  { %v4985_v37 = vpop.eup %4984  ;;  %v1149_v38 = vmul.f32 %v4983_v30, %v953_v29 }
 0x3a2   :  { %v4987_v40 = vpop.eup %4986  ;;  %v1152_v41 = vmul.f32 %v4985_v37, %v956_v32 }
 0x3a3   :  { %v1150_v42 = vmul.f32 %v4987_v40, %v954_v39 }
 0x3a4   :  { %v1166_v43 = vpack.c.bf16 %v1152_v41, %v1151_v31 }
 0x3a5   :  { %v1165_v44 = vpack.c.bf16 %v1150_v42, %v1149_v38 }
 0x3a6   :  { %v1175_v14 = vshrl.u32 %v1166_v43, 16  ;;  %v1178_v20 = vshll.u32 %v1166_v43, 16 }
 0x3a7   :  { %v1168_v45 = vshrl.u32 %v1165_v44, 16  ;;  %v1171_v47 = vshll.u32 %v1165_v44, 16 }
 0x3a8   :  { %v1177_v19 = vrot.slane %v1175_v14, 7 }
 0x3a9   :  { %v1170_v46 = vrot.slane %v1168_v45, 7 }
 0x3aa   :  { %v1180_v48 = vor.u32 %v1178_v20, %v1177_v19  ;;  %v1188_v52 = vsel %vm5172_vm7, %v1177_v19, 0 }
 0x3ab   :  { %v1173_v49 = vor.u32 %v1171_v47, %v1170_v46  ;;  %v1187_v50 = vsel %vm5172_vm7, %v1170_v46, 0  ;;  %v1209_v63 = vshll.u32 %v1188_v52, 16 }
 0x3ac   :  { %v1186_v51 = vsel %vm5172_vm7, 0, %v1180_v48  ;;  %v1197_v60 = vshll.u32 %v1187_v50, 16  ;;  %v1339_v11 = vrot.slane %v1187_v50, 1  ;;  %v1411_v48 = vsub.s32 4, %v5243_v33 }
 0x3ad   :  { %v1185_v53 = vsel %vm5172_vm7, 0, %v1173_v49  ;;  %v1204_v54 = vshll.u32 %v1186_v51, 16  ;;  %v1202_v61 = vshrl.u32 %v1186_v51, 16  ;;  %v1211_v6 = vrot.slane %v1209_v63, 1 }
 0x3ae   :  { %v1192_v59 = vshll.u32 %v1185_v53, 16  ;;  %v1190_v0 = vshrl.u32 %v1185_v53, 16  ;;  %v1199_v5 = vrot.slane %v1197_v60, 1  ;;  %v1338_v10 = vrot.slane %v1185_v53, 1 }
 0x3af   :  { %v1206_v62 = vrot.slane %v1204_v54, 1  ;;  %v1412_v50 = vrot.slane %v5249_v35, %v1411_v48  ;;  %vm2397_vm7 = vsmask.f32 3336 }
 0x3b0   :  { %v1194_v1 = vrot.slane %v1192_v59, 1  ;;  %v1340_v12 = vsel %vm398_vm9, %v1338_v10, %v1339_v11 }
 0x3b1   :  { %v1207_v3 = vor.u32 %v1206_v62, %v1202_v61 }
 0x3b2   :  { %v1195_v4 = vor.u32 %v1194_v1, %v1190_v0 }
 0x3b3   :  { %v1212_v36 = vsel %vm236_vm10, %v1207_v3, %v1211_v6 }
 0x3b4   :  { %v1200_v7 = vsel %vm236_vm10, %v1195_v4, %v1199_v5 }
 0x3b5   :  { %4604 = vmatprep.mubr.msk.bf16.mxu1 %vm1219_vm13, %v1200_v7  ;;  %4622 = vmatprep.mubr.msk.bf16.mxu0 %vm1219_vm13, %v1200_v7 }
 0x3b6   :  { %4605 = vmatmul.mubr.msk.bf16.vlgmr.msra.gmra.mrb[8].mxu1 %vm1219_vm13, %v1212_v36  ;;  %4623 = vmatmul.mubr.msk.bf16.vlgmr.msra.gmra.mrb[16].mxu0 %vm1219_vm13, %v1212_v36 }
 0x3b7   :  { %4627 = vmatpush3.bf16.msra.mxu0 %v5306_v55  ;;  %4610 = vmatprep.mubr.msk.bf16.mxu1 %vm1219_vm13, %v1185_v53  ;;  %v1341_v55 = vrot.slane %v1186_v51, 1 }
 0x3b8   :  { %4628 = vmatprep.mubr.msk.bf16.mxu0 %vm1219_vm13, %v1185_v53  ;;  %4609 = vmatpush3.bf16.msra.mxu1 %v5312_v57  ;;  %v1342_v57 = vrot.slane %v1188_v52, 1 }
 0x3b9   :  { %4632 = vmatprep.subr.bf16.mxu0 %v4890_v8  ;;  %4614 = vmatprep.subr.bf16.mxu1 %v4891_v9 }
 0x3ba   :  { %v1343_v13 = vsel %vm398_vm9, %v1341_v55, %v1342_v57 }
 0x3c2   :  { %4611 = vmatmul.mubr.msk.bf16.vlgmr.msra.gmra.mrb[8].mxu1 %vm1219_vm13, %v1186_v51  ;;  %4629 = vmatmul.mubr.msk.bf16.vlgmr.msra.gmra.mrb[16].mxu0 %vm1219_vm13, %v1186_v51 }
 0x3c3   :  { %4633 = vmatpush3.bf16.msra.mxu0 %v4890_v8  ;;  %4616 = vmatprep.mubr.msk.bf16.mxu1 %vm1219_vm13, %v1340_v12 }
 0x3c4   :  { %4634 = vmatprep.mubr.msk.bf16.mxu0 %vm1219_vm13, %v1340_v12  ;;  %4615 = vmatpush3.bf16.msra.mxu1 %v4891_v9 }
 0x3c5   :  { %4638 = vmatprep.subr.bf16.mxu1 %v5032_v18 }
 0x3ce   :  { %4617 = vmatmul.mubr.msk.bf16.vlgmr.msra.gmra.mrb[8].mxu1 %vm1219_vm13, %v1343_v13  ;;  %4635 = vmatmul.mubr.msk.bf16.vlgmr.msra.gmra.mrb[16].mxu0 %vm1219_vm13, %v1343_v13 }
 0x3cf   :  { %2051 = vmatprep.mubr.bf16.mxu0 %v5031_v2  ;;  %4642 = vmatprep.mubr.msk.bf16.mxu1 %vm5033_vm14, %v5032_v18 }
 0x3d0   :  { %4639 = vmatpush3.bf16.msra.mxu1 %v4892_v15 }
 0x3d1   :  { %4640 = vmatprep.subr.bf16.mxu1 %v5032_v18 }
 0x3d4   :  { %4641 = vmatpush3.bf16.msra.mxu1 %v1676_v17 }
 0x3d5   :  { %4646 = vmatprep.subr.bf16.mxu1 %v5032_v18 }
 0x4a1   :  { %v4618_v23 = vpop.f32.mrb[8].mxu1  ;;  %v4636_v25 = vpop.f32.mrb[16].mxu0 }
 0x4a2   :  { %v1592_v26 = vadd.f32 %v4636_v25, %v1589_v22  ;;  %v1390_v27 = vpop.f32.mrb[9].mxu1  ;;  %v1567_v28 = vpop.f32.mrb[17].mxu0  ;;  %v1415_v51 = vadd.f32 %v4618_v23, %v1412_v50 }
 0x4a3   :  { %v1590_v29 = vadd.f32 %v1589_v22, %v1567_v28  ;;  %v4619_v30 = vpop.f32.mrb[10].mxu1  ;;  %v4637_v31 = vpop.f32.mrb[18].mxu0  ;;  %v1413_v53 = vadd.f32 %v1412_v50, %v1390_v27 }
 0x4a4   :  { %v4262_v32 = vmul.f32 -1.442695, %v1592_v26  ;;  %v1593_v37 = vadd.f32 %v4637_v31, %v1589_v22  ;;  %v1393_v38 = vpop.f32.mrb[11].mxu1  ;;  %v1570_v39 = vpop.f32.mrb[19].mxu0  ;;  %v1416_v60 = vadd.f32 %v4619_v30, %v1412_v50  ;;  %v4894_v31 = vld [vmem:[%s5988_s6 + $0xc] sm:$0xff]  }
 0x4a5   :  { %v4260_v40 = vmul.f32 -1.442695, %v1590_v29  ;;  %v1591_v41 = vadd.f32 %v1589_v22, %v1570_v39  ;;  %v1414_v63 = vadd.f32 %v1412_v50, %v1393_v38  ;;  %v4898_v39 = vld [vmem:[%s5989_s7 + $0x4] ss:$40 sps:$4 sm:$0xff]  }
 0x4a6   :  { %4988 = vpow2.f32 %v4262_v32  ;;  %v4263_v42 = vmul.f32 -1.442695, %v1593_v37  ;;  %v4895_v37 = vld [vmem:[%s5988_s6 + $0x14] ss:$0 sps:$4 sm:$0xff]   ;;  %2019 = vmatprep.subr.bf16.mxu0 %v4898_v39 }
 0x4a7   :  { %4990 = vpow2.f32 %v4260_v40  ;;  %v4261_v43 = vmul.f32 -1.442695, %v1591_v41  ;;  %v1733_v38 = vsel %vm768_vm11, %v4895_v37, 0  ;;  %v4901_v40 = vld [vmem:[%s5989_s7 + $0xc] ss:$40 sps:$4 sm:$0xff]  }
 0x4a8   :  { %4992 = vpow2.f32 %v4263_v42  ;;  %v4896_v41 = vld [vmem:[%s5989_s7] ss:$40 sps:$4 sm:$0xff]  }
 0x4a9   :  { %4994 = vpow2.f32 %v4261_v43  ;;  %v4899_v42 = vld [vmem:[%s5989_s7 + $0x8] ss:$40 sps:$4 sm:$0xff]   ;;  %2020 = vmatpush1.bf16.msra.mxu0 %v4896_v41 }
 0x4aa   :  { %v1899_v43 = vld [vmem:[%s5989_s7 + $0x50] sm:$0xff] }
 0x4b0   :  { %v4989_v44 = vpop.eup %4988 }
 0x4b1   :  { %v4991_v14 = vpop.eup %4990  ;;  %v1608_v45 = vadd.f32 1.0, %v4989_v44  ;;  %v4281_v44 = vcombine.high %v1899_v43, %v1899_v43 }
 0x4b2   :  { %v4993_v19 = vpop.eup %4992  ;;  %v1606_v20 = vadd.f32 1.0, %v4991_v14  ;;  %v4280_v14 = vcombine.low %v1899_v43, %v1899_v43 }
 0x4b3   :  { %v4995_v46 = vpop.eup %4994  ;;  %4996 = vrcp.f32 %v1608_v45  ;;  %v1609_v47 = vadd.f32 1.0, %v4993_v19  ;;  %v1900_v45 = vld [vmem:[%s5989_s7 + $0x58] sm:$0xff]  ;;  %4290 = vmatprep.subr.msk.bf16.mxu0 %vm768_vm11, %v4281_v44 }
 0x4b4   :  { %4998 = vrcp.f32 %v1606_v20  ;;  %v1607_v49 = vadd.f32 1.0, %v4995_v46  ;;  %v4283_v19 = vcombine.high %v1900_v45, %v1900_v45  ;;  %v4282_v20 = vcombine.low %v1900_v45, %v1900_v45 }
 0x4b5   :  { %5000 = vrcp.f32 %v1609_v47  ;;  %v1990_v46 = vsel %vm768_vm11, %v4280_v14, 0  ;;  %v4908_v47 = vld [vmem:[%s5989_s7 + $0x14] ss:$40 sps:$4 sm:$0xff]  }
 0x4b6   :  { %5002 = vrcp.f32 %v1607_v49  ;;  %v1996_v48 = vsel %vm768_vm11, %v4282_v20, 0  ;;  %2022 = vmatpush1.bf16.msra.mxu0 %v1990_v46  ;;  %v4911_v49 = vld [vmem:[%s5989_s7 + $0x1c] ss:$40 sps:$4 sm:$0xff]  }
 0x4b7   :  { %2101 = vmatprep.subr.bf16.mxu0 %v4908_v47  ;;  %v1901_v20 = vld [vmem:[%s5989_s7 + $0x60] sm:$0xff] }
 0x4bd   :  { %v4997_v52 = vpop.eup %4996 }
 0x4be   :  { %v4999_v54 = vpop.eup %4998  ;;  %v1620_v59 = vmul.f32 %v4997_v52, %v1415_v51  ;;  %v1721_v52 = vsub.s32 7, %v5243_v33 }
 0x4bf   :  { %v5001_v61 = vpop.eup %5000  ;;  %v1618_v62 = vmul.f32 %v4999_v54, %v1413_v53 }
 0x4c0   :  { %v5003_v0 = vpop.eup %5002  ;;  %v1621_v1 = vmul.f32 %v5001_v61, %v1416_v60  ;;  %v1638_v4 = vsel %vm1628_vm15, %v1620_v59, 0.0  ;;  %v1722_v59 = vrot.slane %v5249_v35, %v1721_v52  ;;  %v1654_v60 = vsub.s32 6, %v5243_v33 }
 0x4c1   :  { %v1619_v3 = vmul.f32 %v5003_v0, %v1414_v63  ;;  %v1629_v6 = vsel %vm1628_vm15, %v1618_v62, 0.0  ;;  %v4285_v52 = vcombine.high %v1901_v20, %v1901_v20 }
 0x4c2   :  { %v1639_v5 = vsel %vm1628_vm15, %v1621_v1, 0.0 }
 0x4c3   :  { %v1640_v7 = vadd.f32 %v1639_v5, %v1638_v4  ;;  %v1630_v36 = vsel %vm1628_vm15, %v1619_v3, 0.0  ;;  %v5034_v4 = vmov 1966171168  }
 0x4c4   :  { %v1631_v8 = vadd.f32 %v1630_v36, %v1629_v6  ;;  %v1783_v5 = vunpack.c.l.s4 %v5034_v4  ;;  %v1655_v6 = vrot.slane %v5249_v35, %v1654_v60  ;;  %v1776_v35 = vld [vmem:[%s5983_s1] sm:$0x1] }
 0x4c5   :  { %v1641_v9 = vrot.slane %v1640_v7, 4 }
 0x4c6   :  { %v1632_v10 = vrot.slane %v1631_v8, 4 }
 0x4c7   :  { %v1642_v11 = vadd.f32 %v1641_v9, %v1640_v7 }
 0x4c8   :  { %v1633_v12 = vadd.f32 %v1632_v10, %v1631_v8  ;;  %v1784_v8 = vunpack.c.0.s8 %v1783_v5 }
 0x4c9   :  { %v1643_v55 = vrot.slane %v1642_v11, 2 }
 0x4ca   :  { %v1634_v57 = vrot.slane %v1633_v12, 2  ;;  %v5423_v10 = vsub.s32 %v1784_v8, %v5243_v33  ;;  %v4924_v8 = vld [vmem:[%s5990_s8 + $0x58] sm:$0xff]  }
 0x4cb   :  { %v1644_v13 = vadd.f32 %v1643_v55, %v1642_v11 }
 0x4cc   :  { %v1635_v15 = vadd.f32 %v1634_v57, %v1633_v12 }
 0x4cd   :  { %v1645_v16 = vrot.slane %v1644_v13, 1 }
 0x4ce   :  { %v1636_v17 = vrot.slane %v1635_v15, 1 }
 0x4cf   :  { %v1646_v21 = vadd.f32 %v1645_v16, %v1644_v13 }
 0x4d0   :  { %v1637_v22 = vadd.f32 %v1636_v17, %v1635_v15 }
 0x4d1   :  { %v1649_v23 = vmul.f32 0.0625, %v1646_v21 }
 0x4d2   :  { %v1648_v25 = vmul.f32 0.0625, %v1637_v22 }
 0x4d3   :  { %v1651_v26 = vpack.c.bf16 %v1649_v23, %v1649_v23  ;;  %v1777_v23 = vld [vmem:[%s5983_s1 + $0x1] sm:$0x1] }
 0x4d4   :  { %v1650_v27 = vpack.c.bf16 %v1648_v25, %v1648_v25 }
 0x4d5   :  { %v1659_v28 = vunpack.c.l.b16 %v1651_v26 }
 0x4d6   :  { %v1658_v29 = vunpack.c.l.b16 %v1650_v27 }
 0x4d8   :  { %v1661_v30 = vsel %vm1660_vm0, %v1659_v28, %v1658_v29 }
 0x4d9   :  { %v1662_v32 = vpack.c.b16 %v1661_v30, %v1661_v30 }
 0x4db   :  { %4643 = vmatmul.mubr.msk.bf16.vlgmr.msra.gmra.mrb[12].mxu1 %vm1628_vm15, %v1662_v32 }
 0x4dc   :  { %4647 = vmatpush3.bf16.msra.mxu1 %v4894_v31  ;;  %4650 = vmatprep.mubr.msk.bf16.mxu1 %vm5033_vm14, %v5032_v18  ;;  %vm2401_vm14 = vsmask.f32 7448 }
 0x4dd   :  { %4648 = vmatprep.subr.bf16.mxu1 %v5032_v18 }
 0x4e0   :  { %4649 = vmatpush3.bf16.msra.mxu1 %v1733_v38 }
 0x4e1   :  { %2060 = vmatprep.subr.bf16.mxu1 %v4901_v40 }
 0x4e3   :  { %4651 = vmatmul.mubr.msk.bf16.vlgmr.msra.gmra.mrb[16].mxu1 %vm1628_vm15, %v1662_v32 }
 0x4e4   :  { %2092 = vmatprep.mubr.bf16.mxu1 %v5031_v2  ;;  %2061 = vmatpush1.bf16.msra.mxu1 %v4899_v42 }
 0x4e5   :  { %4292 = vmatprep.subr.msk.bf16.mxu1 %vm768_vm11, %v4283_v19 }
 0x4e8   :  { %2063 = vmatpush1.bf16.msra.mxu1 %v1996_v48  ;;  %v1902_v48 = vld [vmem:[%s5989_s7 + $0x68] sm:$0xff] }
 0x4e9   :  { %2142 = vmatprep.subr.bf16.mxu1 %v4911_v49  ;;  %v4906_v49 = vld [vmem:[%s5989_s7 + $0x10] ss:$40 sps:$4 sm:$0xff]   ;;  %v4286_v60 = vcombine.low %v1902_v48, %v1902_v48 }
 0x5ae   :  { %v1712_v50 = vpop.f32.mrb[12].mxu1 }
 0x5af   :  { %v4644_v51 = vpop.f32.mrb[13].mxu1  ;;  %v1713_v9 = vadd.f32 %v1712_v50, %v1655_v6  ;;  %v4921_v6 = vld [vmem:[%s5990_s8 + $0x40] sm:$0xff]  }
 0x5b0   :  { %v1715_v53 = vpop.f32.mrb[14].mxu1  ;;  %v4909_v51 = vld [vmem:[%s5989_s7 + $0x18] ss:$40 sps:$4 sm:$0xff]  }
 0x5b1   :  { %v4645_v54 = vpop.f32.mrb[15].mxu1  ;;  %v1718_v11 = vmax.f32 %v1713_v9, 0.0  ;;  %v4925_v9 = vld [vmem:[%s5990_s8 + $0x60] sm:$0xff]  }
 0x5b2   :  { %v4284_v54 = vcombine.low %v1901_v20, %v1901_v20 }
 0x5b3   :  { %v1815_v12 = vrot.slane %v1718_v11, %v5423_v10  ;;  %v4926_v11 = vld [vmem:[%s5990_s8 + $0x68] sm:$0xff]  }
 0x5b5   :  { %v1816_v13 = vcombine.high %v1815_v12, %v1815_v12  ;;  %v1823_v17 = vrot.slane %v1815_v12, %v5423_v10  ;;  %v4927_v12 = vld [vmem:[%s5990_s8 + $0x70] sm:$0xff]  }
 0x5b6   :  { %v1769_v61 = vpop.f32.mrb[16].mxu1 }
 0x5b7   :  { %v1770_v62 = vadd.f32 %v1769_v61, %v1722_v59  ;;  %v4652_v63 = vpop.f32.mrb[17].mxu1  ;;  %v1830_v26 = vrot.slane %v1816_v13, %v5423_v10  ;;  %v1861_v30 = vrot.slane %v1823_v17, %v5255_v56  ;;  %v4287_v59 = vcombine.high %v1902_v48, %v1902_v48 }
 0x5b8   :  { %v1772_v0 = vpop.f32.mrb[18].mxu1  ;;  %v2002_v61 = vsel %vm768_vm11, %v4284_v54, 0  ;;  %v4918_v63 = vld [vmem:[%s5989_s7 + $0x24] ss:$40 sps:$4 sm:$0xff]   ;;  %v5035_v13 = vmov 1983009808  }
 0x5b9   :  { %v1775_v1 = vmax.f32 %v1770_v62, 0.0  ;;  %v4653_v3 = vpop.f32.mrb[19].mxu1  ;;  %v1865_v38 = vrot.slane %v1830_v26, %v5255_v56  ;;  %v2008_v62 = vsel %vm768_vm11, %v4286_v60, 0  ;;  %v1903_v0 = vld [vmem:[%s5989_s7 + $0x70] sm:$0xff] }
 0x5ba   :  { %v4289_v3 = vcombine.high %v1903_v0, %v1903_v0  ;;  %v4288_v4 = vcombine.low %v1903_v0, %v1903_v0 }
 0x5bb   :  { %v1778_v7 = vmul.f32 0.5, %v1775_v1  ;;  %v1842_v55 = vrot.slane %v1775_v1, %v5423_v10  ;;  %v4916_v1 = vld [vmem:[%s5989_s7 + $0x20] ss:$40 sps:$4 sm:$0xff]  }
 0x5bc   :  { %v2014_v5 = vsel %vm768_vm11, %v4288_v4, 0 }
 0x5bd   :  { %v1779_v36 = vmul.f32 1.442695, %v1778_v7  ;;  %v1843_v16 = vcombine.high %v1842_v55, %v1842_v55  ;;  %v1850_v25 = vrot.slane %v1842_v55, %v5423_v10  ;;  %v4922_v7 = vld [vmem:[%s5990_s8 + $0x48] sm:$0xff]   ;;  %v4928_v55 = vld [vmem:[%s5990_s8 + $0x78] sm:$0xff]  }
 0x5bf   :  { %5004 = vpow2.f32 %v1779_v36  ;;  %v1857_v29 = vrot.slane %v1843_v16, %v5423_v10  ;;  %v1871_v37 = vrot.slane %v1850_v25, %v5255_v56  ;;  %v4923_v36 = vld [vmem:[%s5990_s8 + $0x50] sm:$0xff]  }
 0x5c1   :  { %v1875_v41 = vrot.slane %v1857_v29, %v5255_v56 }
 0x5c9   :  { %v5005_v57 = vpop.eup %5004 }
 0x5ca   :  { %v1788_v15 = vrot.slane %v5005_v57, %v5423_v10  ;;  %v5515_v57 = vld [vmem:[%s5990_s8] sm:$0xff]  }
 0x5cc   :  { %v1789_v21 = vcombine.high %v1788_v15, %v1788_v15  ;;  %v1796_v22 = vrot.slane %v1788_v15, %v5423_v10  ;;  %v2226_v15 = vunpack.c.l.s4 %v5035_v13 }
 0x5ce   :  { %v1803_v27 = vrot.slane %v1789_v21, %v5423_v10  ;;  %v1806_v28 = vmul.f32 %v1796_v22, %v1776_v35  ;;  %v2227_v35 = vunpack.c.0.s8 %v2226_v15 }
 0x5d0   :  { %v1807_v31 = vmul.f32 %v1803_v27, %v1777_v23  ;;  %v1833_v32 = vadd.f32 %v1823_v17, %v1806_v28  ;;  %v5519_v16 = vsub.s32 %v2227_v35, %v5243_v33 }
 0x5d2   :  { %v1834_v39 = vadd.f32 %v1830_v26, %v1807_v31  ;;  %v1879_v40 = vsel %vm229_vm5, %v1833_v32, %v1861_v30  ;;  %v1887_v44 = vpack.c.bf16 %v1833_v32, %v1833_v32 }
 0x5d3   :  { %v1882_v42 = vsel %vm1881_vm1, %v1879_v40, %v1871_v37  ;;  %v5036_v37 = vmov 1934713408  }
 0x5d4   :  { %v1880_v43 = vsel %vm229_vm5, %v1834_v39, %v1865_v38  ;;  %1885 = vst.msk [vmem:[%s5995_s13] sm:$0x7] %vm1884_vm2, %v1882_v42  ;;  %v1888_v14 = vpack.c.bf16 %v1834_v39, %v1834_v39  ;;  %v1906_v46 = vunpack.c.l.b16 %v1887_v44  ;;  %v2258_v38 = vunpack.c.l.s4 %v5036_v37 }
 0x5d5   :  { %v1883_v45 = vsel %vm1881_vm1, %v1880_v43, %v1875_v41  ;;  %vm2719_vm1 = vcmask 1044484  }
 0x5d6   :  { %1886 = vst.msk [vmem:[%s5995_s13 + $0x4] sm:$0x7] %vm1884_vm2, %v1883_v45  ;;  %v1907_v19 = vunpack.c.l.b16 %v1888_v14  ;;  %v2259_v40 = vunpack.c.0.s8 %v2258_v38  ;;  %v5526_v45 = vld [vmem:[%s5994_s12 + $0x8] sm:$0xff] }
 0x5d8   :  { %v1908_v47 = vrot.slane %v1907_v19, 7 }
 0x5da   :  { %v1909_v50 = vsel %vm1660_vm0, %v1908_v47, %v1906_v46  ;;  %v50_v47 = vld [vmem:[%s5994_s12 + $0x10] sm:$0x3f]  ;;  %vm2717_vm0 = vcmask 1042434  }
 0x5db   :  { %v1910_v53 = vpack.c.b16 %v1909_v50, %v1909_v50  ;;  %v2286_v54 = vrot.slane %v50_v47, 4 }
 0x5dd   :  { %4291 = vmatmul.mubr.msk.bf16.vlgmr.msra.gmra.mrb[20].mxu0 %vm1628_vm15, %v1910_v53  ;;  %4293 = vmatmul.mubr.msk.bf16.vlgmr.msra.gmra.mrb[20].mxu1 %vm1628_vm15, %v1910_v53 }
 0x5de   :  { %2102 = vmatpush1.bf16.msra.mxu0 %v4906_v49  ;;  %2143 = vmatpush1.bf16.msra.mxu1 %v4909_v51  ;;  %v2262_v51 = vsub.s32 %v2259_v40, %v5243_v33 }
 0x5df   :  { %4294 = vmatprep.subr.msk.bf16.mxu0 %vm768_vm11, %v4285_v52  ;;  %4296 = vmatprep.subr.msk.bf16.mxu1 %vm768_vm11, %v4287_v59 }
 0x5e0   :  { %2133 = vmatprep.mubr.bf16.mxu0 %v5031_v2  ;;  %2174 = vmatprep.mubr.bf16.mxu1 %v5031_v2 }
 0x5e2   :  { %2104 = vmatpush1.bf16.msra.mxu0 %v2002_v61  ;;  %2145 = vmatpush1.bf16.msra.mxu1 %v2008_v62 }
 0x5e3   :  { %2183 = vmatprep.subr.bf16.mxu0 %v4918_v63  ;;  %4654 = vmatprep.subr.bf16.mxu1 %v4921_v6 }
 0x5e5   :  { %4295 = vmatmul.mubr.msk.bf16.vlgmr.msra.gmra.mrb[24].mxu0 %vm1628_vm15, %v1910_v53  ;;  %4297 = vmatmul.mubr.msk.bf16.vlgmr.msra.gmra.mrb[24].mxu1 %vm1628_vm15, %v1910_v53 }
 0x5e6   :  { %2184 = vmatpush1.bf16.msra.mxu0 %v4916_v1  ;;  %2215 = vmatprep.mubr.bf16.mxu0 %v5031_v2 }
 0x5e7   :  { %4298 = vmatprep.subr.msk.bf16.mxu0 %vm768_vm11, %v4289_v3  ;;  %4655 = vmatpush3.bf16.msra.mxu1 %v4921_v6 }
 0x5e8   :  { %4656 = vmatprep.subr.bf16.mxu1 %v4922_v7 }
 0x5ea   :  { %2186 = vmatpush1.bf16.msra.mxu0 %v2014_v5 }
 0x5eb   :  { %4657 = vmatpush3.bf16.msra.mxu1 %v4922_v7 }
 0x5ec   :  { %4658 = vmatprep.subr.bf16.mxu1 %v4923_v36 }
 0x5ed   :  { %4299 = vmatmul.mubr.msk.bf16.vlgmr.msra.gmra.mrb[28].mxu0 %vm1628_vm15, %v1910_v53  ;;  %v2285_v53 = vrot.slane %v5526_v45, 4  ;;  %vm2398_vm15 = vmor %vm2396_vm4, %vm2397_vm7 }
 0x5ee   :  { %vm2400_vm2 = vmor %vm2398_vm15, %vm2399_vm8  ;;  %vm3024_vm15 = vsmask.f32 1284 }
 0x5ef   :  { %4659 = vmatpush3.bf16.msra.mxu1 %v4923_v36  ;;  %v2287_v0 = vsel %vm768_vm11, %v2285_v53, %v2286_v54  ;;  %vm5574_vm4 = vmor %vm2400_vm2, %vm2401_vm14  ;;  %vm3028_vm2 = vsmask.f32 3340 }
 0x5f0   :  { %4660 = vmatprep.subr.bf16.mxu1 %v4924_v8  ;;  %vm2718_vm7 = vmor %vm229_vm5, %vm2717_vm0 }
 0x5f1   :  { %vm2720_vm8 = vmor %vm2718_vm7, %vm2719_vm1  ;;  %vm3026_vm1 = vsmask.f32 2312  ;;  %vm3030_vm7 = vsmask.f32 4368 }
 0x5f2   :  { %vm3025_vm0 = vmor %vm230_vm6, %vm3024_vm15  ;;  %vm3034_vm15 = vsmask.f32 6424 }
 0x5f3   :  { %4661 = vmatpush3.bf16.msra.mxu1 %v4924_v8 }
 0x5f4   :  { %4662 = vmatprep.subr.bf16.mxu1 %v4925_v9 }
 0x5f7   :  { %4663 = vmatpush3.bf16.msra.mxu1 %v4925_v9 }
 0x5f8   :  { %4664 = vmatprep.subr.bf16.mxu1 %v4926_v11 }
 0x5fb   :  { %4665 = vmatpush3.bf16.msra.mxu1 %v4926_v11 }
 0x5fc   :  { %4666 = vmatprep.subr.bf16.mxu1 %v4927_v12 }
 0x5ff   :  { %4667 = vmatpush3.bf16.msra.mxu1 %v4927_v12 }
 0x600   :  { %4668 = vmatprep.subr.bf16.mxu1 %v4928_v55 }
 0x603   :  { %4669 = vmatpush3.bf16.msra.mxu1 %v4928_v55 }
 0x604   :  { %4674 = vmatprep.subr.bf16.mxu1 %v5515_v57 }
 0x6b0   :  { %v2053_v17 = vpop.f32.mrb[20].mxu0  ;;  %v2094_v21 = vpop.f32.mrb[20].mxu1 }
 0x6b1   :  { %v2224_v22 = vcombine.low %v2053_v17, %v2094_v21  ;;  %v2055_v23 = vpop.f32.mrb[21].mxu0  ;;  %v2096_v25 = vpop.f32.mrb[21].mxu1 }
 0x6b2   :  { %v2232_v26 = vcombine.low %v2055_v23, %v2096_v25  ;;  %v2057_v27 = vpop.f32.mrb[22].mxu0  ;;  %v2098_v28 = vpop.f32.mrb[22].mxu1 }
 0x6b3   :  { %v2231_v29 = vrot.slane %v2224_v22, %v5519_v16  ;;  %v2058_v30 = vpop.f32.mrb[23].mxu0  ;;  %v2099_v31 = vpop.f32.mrb[23].mxu1 }
 0x6b4   :  { %v2239_v32 = vrot.slane %v2232_v26, %v5519_v16 }
 0x6b6   :  { %v2256_v39 = vcombine.low %v2231_v29, %v2239_v32 }
 0x6b8   :  { %v2135_v41 = vpop.f32.mrb[24].mxu0  ;;  %v2176_v42 = vpop.f32.mrb[24].mxu1  ;;  %v2263_v60 = vrot.slane %v2256_v39, %v2262_v51 }
 0x6b9   :  { %v2240_v43 = vcombine.low %v2135_v41, %v2176_v42  ;;  %v2137_v44 = vpop.f32.mrb[25].mxu0  ;;  %v2178_v14 = vpop.f32.mrb[25].mxu1 }
 0x6ba   :  { %v2248_v19 = vcombine.low %v2137_v44, %v2178_v14  ;;  %v2139_v20 = vpop.f32.mrb[26].mxu0  ;;  %v2180_v46 = vpop.f32.mrb[26].mxu1 }
 0x6bb   :  { %v2247_v48 = vrot.slane %v2240_v43, %v5519_v16  ;;  %v2140_v49 = vpop.f32.mrb[27].mxu0  ;;  %v2181_v50 = vpop.f32.mrb[27].mxu1 }
 0x6bc   :  { %v2255_v52 = vrot.slane %v2248_v19, %v5519_v16 }
 0x6be   :  { %v2264_v59 = vcombine.low %v2247_v48, %v2255_v52 }
 0x6c0   :  { %v2271_v61 = vrot.slane %v2264_v59, %v2262_v51  ;;  %v2217_v62 = vpop.f32.mrb[28].mxu0 }
 0x6c1   :  { %v2219_v63 = vpop.f32.mrb[29].mxu0 }
 0x6c2   :  { %v2272_v1 = vcombine.low %v2263_v60, %v2271_v61  ;;  %v2273_v3 = vcombine.high %v2263_v60, %v2271_v61  ;;  %v2274_v4 = vcombine.low %v2217_v62, %v2219_v63  ;;  %v2221_v5 = vpop.f32.mrb[30].mxu0 }
 0x6c3   :  { %v2222_v6 = vpop.f32.mrb[31].mxu0 }
 0x6c4   :  { %v2281_v7 = vrot.slane %v2274_v4, %v2262_v51  ;;  %v2290_v36 = vadd.f32 %v2287_v0, %v2272_v1  ;;  %v2292_v11 = vadd.f32 %v2287_v0, %v2273_v3 }
 0x6c6   :  { %v2282_v8 = vcombine.high %v2281_v7, %v5032_v18  ;;  %v2291_v9 = vadd.f32 %v2286_v54, %v2281_v7  ;;  %v2294_v55 = vmax.f32 %v2290_v36, 0.0  ;;  %v2296_v15 = vmax.f32 %v2292_v11, 0.0 }
 0x6c8   :  { %v2293_v12 = vadd.f32 %v2286_v54, %v2282_v8  ;;  %v2295_v13 = vmax.f32 %v2291_v9, 0.0 }
 0x6ca   :  { %v2297_v35 = vmax.f32 %v2293_v12, 0.0  ;;  %v2346_v17 = vpack.c.bf16 %v2295_v13, %v2294_v55 }
 0x6cc   :  { %v2347_v21 = vpack.c.bf16 %v2297_v35, %v2296_v15  ;;  %v2350_v22 = vrot.slane %v2346_v17, 7 }
 0x6ce   :  { %v2351_v23 = vrot.slane %v2347_v21, 7  ;;  %v2354_v25 = vsel %vm229_vm5, 0, %v2350_v22 }
 0x6cf   :  { %v2358_v26 = vsel %vm2357_vm3, %v2354_v25, 0 }
 0x6d0   :  { %v2356_v27 = vsel %vm229_vm5, 0, %v2351_v23  ;;  %v2362_v18 = vcombine.high %v2358_v26, %v2358_v26  ;;  %v5540_v28 = vrot.slane %v2358_v26, %v5519_v16 }
 0x6d1   :  { %v2359_v29 = vsel %vm2357_vm3, %v2356_v27, 0  ;;  %vm2721_vm3 = vcmask 1046534  }
 0x6d2   :  { %v5543_v30 = vrot.slane %v2362_v18, %v5519_v16  ;;  %v2378_v31 = vcombine.high %v2359_v29, %v2359_v29  ;;  %v5546_v32 = vrot.slane %v2359_v29, %v5519_v16  ;;  %v5550_v37 = vcombine.high %v5540_v28, %v5540_v28  ;;  %vm5606_vm14 = vmor %vm2720_vm8, %vm2721_vm3 }
 0x6d3   :  { %v2404_v38 = vshrl.u32 %v5540_v28, 16  ;;  %v2407_v39 = vshll.u32 %v5540_v28, 16  ;;  %v4316_v27 = vrot.slane %v5540_v28, 9  ;;  %vm3027_vm3 = vmor %vm3025_vm0, %vm3026_vm1  ;;  %vm3032_vm8 = vsmask.f32 5396 }
 0x6d4   :  { %v5555_v40 = vrot.slane %v2378_v31, %v5519_v16  ;;  %v5559_v41 = vcombine.high %v5546_v32, %v5546_v32  ;;  %v5563_v42 = vcombine.high %v5543_v30, %v5543_v30  ;;  %v2413_v43 = vshll.u32 %v5550_v37, 16 }
 0x6d5   :  { %v2406_v44 = vrot.slane %v2404_v38, 6  ;;  %v2409_v14 = vrot.slane %v2407_v39, 7  ;;  %v2417_v19 = vshrl.u32 %v5550_v37, 16  ;;  %v2423_v20 = vshll.u32 %v5543_v30, 16 }
 0x6d6   :  { %v2415_v46 = vrot.slane %v2413_v43, 7  ;;  %v2427_v47 = vshrl.u32 %v5543_v30, 16  ;;  %v2433_v48 = vshll.u32 %v5563_v42, 16  ;;  %v2438_v49 = vshrl.u32 %v5546_v32, 16 }
 0x6d7   :  { %v2410_v50 = vor.u32 %v2409_v14, %v2406_v44  ;;  %v2419_v51 = vrot.slane %v2417_v19, 6  ;;  %v2425_v52 = vrot.slane %v2423_v20, 7  ;;  %v2441_v53 = vshll.u32 %v5546_v32, 16 }
 0x6d8   :  { %v2429_v59 = vrot.slane %v2427_v47, 6  ;;  %v2435_v60 = vrot.slane %v2433_v48, 7  ;;  %v2440_v61 = vrot.slane %v2438_v49, 6  ;;  %v2447_v62 = vshll.u32 %v5559_v41, 16 }
 0x6d9   :  { %v2411_v63 = vrot.slane %v2410_v50, 2  ;;  %v2420_v0 = vor.u32 %v2419_v51, %v2415_v46  ;;  %v2443_v1 = vrot.slane %v2441_v53, 7  ;;  %v5581_v3 = vcombine.high %v5555_v40, %v5555_v40 }
 0x6da   :  { %v2430_v4 = vor.u32 %v2429_v59, %v2425_v52  ;;  %v2449_v5 = vrot.slane %v2447_v62, 7  ;;  %v2451_v6 = vshrl.u32 %v5559_v41, 16  ;;  %v2457_v7 = vshll.u32 %v5555_v40, 16 }
 0x6db   :  { %v2416_v36 = vsel %vm5574_vm4, %v2411_v63, %v2415_v46  ;;  %v2421_v8 = vrot.slane %v2420_v0, 2  ;;  %v2444_v9 = vor.u32 %v2443_v1, %v2440_v61  ;;  %v2461_v11 = vshrl.u32 %v5555_v40, 16  ;;  %v4930_v1 = vld [vmem:[%s5990_s8 + $0x8] sm:$0xff]  }
 0x6dc   :  { %v2431_v12 = vrot.slane %v2430_v4, 2  ;;  %v2453_v55 = vrot.slane %v2451_v6, 6  ;;  %v2459_v13 = vrot.slane %v2457_v7, 7  ;;  %v2467_v15 = vshll.u32 %v5581_v3, 16 }
 0x6dd   :  { %v2426_v35 = vsel %vm5574_vm4, %v2421_v8, %v2425_v52  ;;  %v2445_v17 = vrot.slane %v2444_v9, 2  ;;  %v2463_v21 = vrot.slane %v2461_v11, 6  ;;  %v2594_v22 = vcombine.low %v5540_v28, %v5550_v37  ;;  %v4931_v11 = vld [vmem:[%s5990_s8 + $0x10] sm:$0xff]  }
 0x6de   :  { %v2436_v23 = vsel %vm5574_vm4, %v2431_v12, %v2435_v60  ;;  %v2471_v25 = vcombine.low %v2416_v36, %v2426_v35  ;;  %v2454_v26 = vor.u32 %v2453_v55, %v2449_v5  ;;  %v2595_v31 = vcombine.low %v5543_v30, %v5546_v32  ;;  %v4934_v35 = vld [vmem:[%s5990_s8 + $0x28] sm:$0xff]  }
 0x6df   :  { %v2450_v18 = vsel %vm5574_vm4, %v2445_v17, %v2449_v5  ;;  %v2464_v29 = vor.u32 %v2463_v21, %v2459_v13  ;;  %v2602_v38 = vrot.slane %v2594_v22, %v5519_v16  ;;  %v2469_v14 = vrot.slane %v2467_v15, 7  ;;  %v4933_v15 = vld [vmem:[%s5990_s8 + $0x20] sm:$0xff]   ;;  %v4935_v17 = vld [vmem:[%s5990_s8 + $0x30] sm:$0xff]   ;;  %v4936_v21 = vld [vmem:[%s5990_s8 + $0x38] sm:$0xff]  }
 0x6e0   :  { %v2472_v39 = vcombine.low %v2436_v23, %v2450_v18  ;;  %v2479_v43 = vrot.slane %v2471_v25, %v5519_v16  ;;  %v2455_v44 = vrot.slane %v2454_v26, 2  ;;  %v2609_v20 = vrot.slane %v2595_v31, %v5519_v16  ;;  %v4937_v23 = vld [vmem:[%s5990_s8 + $0x80] sm:$0xff]   ;;  %v4938_v26 = vld [vmem:[%s5990_s8 + $0x88] sm:$0xff]   ;;  %v4944_v31 = vld [vmem:[%s5990_s8 + $0xb8] sm:$0xff]  }
 0x6e1   :  { %v2465_v28 = vrot.slane %v2464_v29, 2  ;;  %v2725_v46 = vrot.slane %v5550_v37, 7  ;;  %v2728_v47 = vrot.slane %v5543_v30, 7  ;;  %v2731_v50 = vrot.slane %v5563_v42, 7  ;;  %v4942_v18 = vld [vmem:[%s5990_s8 + $0xa8] sm:$0xff]   ;;  %v4943_v29 = vld [vmem:[%s5990_s8 + $0xb0] sm:$0xff]  }
 0x6e2   :  { %v2486_v48 = vrot.slane %v2472_v39, %v5519_v16  ;;  %v2460_v49 = vsel %vm5574_vm4, %v2455_v44, %v2459_v13  ;;  %v2610_v52 = vcombine.low %v2602_v38, %v2609_v20  ;;  %v4317_v30 = vrot.slane %v5546_v32, 9  ;;  %v4945_v39 = vld [vmem:[%s5991_s9 + $0x8] sm:$0xff]  }
 0x6e3   :  { %v2470_v51 = vsel %vm5574_vm4, %v2465_v28, %v2469_v14  ;;  %v2726_v53 = vsel %vm5606_vm14, %v4316_v27, %v2725_v46  ;;  %v2727_v59 = vrot.slane %v2725_v46, 2  ;;  %v2730_v37 = vrot.slane %v2728_v47, 2  ;;  %v4941_v27 = vld [vmem:[%s5990_s8 + $0xa0] sm:$0xff]   ;;  %4714 = vmatprep.subr.bf16.mxu0 %v4945_v39  ;;  %vm3029_vm4 = vmor %vm3027_vm3, %vm3028_vm2 }
 0x6e4   :  { %v2487_v60 = vcombine.low %v2479_v43, %v2486_v48  ;;  %v2488_v61 = vcombine.low %v2460_v49, %v2470_v51  ;;  %v2735_v63 = vrot.slane %v5559_v41, 7  ;;  %v2738_v42 = vrot.slane %v5555_v40, 7  ;;  %4715 = vmatpush3.bf16.msra.mxu0 %v4945_v39  ;;  %v5694_v43 = vld [vmem:[%s5991_s9] sm:$0xff]   ;;  %vm3031_vm6 = vmor %vm3029_vm4, %vm3030_vm7 }
 0x6e5   :  { %v2729_v62 = vsel %vm5606_vm14, %v2727_v59, %v2728_v47  ;;  %v2741_v54 = vrot.slane %v5581_v3, 7  ;;  %v2732_v4 = vsel %vm5606_vm14, %v2730_v37, %v2731_v50  ;;  %v2611_v22 = vcombine.low %v5559_v41, %v5555_v40  ;;  %v4939_v40 = vld [vmem:[%s5990_s8 + $0x90] sm:$0xff]   ;;  %v4940_v41 = vld [vmem:[%s5990_s8 + $0x98] sm:$0xff]   ;;  %4720 = vmatprep.subr.bf16.mxu0 %v5694_v43 }
 0x6e6   :  { %4670 = vmatprep.mubr.bf16.mxu1 %v2487_v60  ;;  %v2495_v0 = vrot.slane %v2488_v61, %v5519_v16  ;;  %v2743_v32 = vcombine.low %v2726_v53, %v2729_v62  ;;  %v2736_v5 = vsel %vm5606_vm14, %v4317_v30, %v2735_v63  ;;  %v2737_v6 = vrot.slane %v2735_v63, 2 }
 0x6e7   :  { %v2740_v7 = vrot.slane %v2738_v42, 2  ;;  %v2744_v36 = vcombine.low %v2732_v4, %v2736_v5  ;;  %v2618_v25 = vrot.slane %v2611_v22, %v5519_v16  ;;  %v2881_v44 = vrot.slane %v5526_v45, %v5255_v56 }
 0x6e8   :  { %4671 = vmatmul.mubr.bf16.vlgmr.msra.gmra.mrb[28].mxu1 %v2495_v0  ;;  %v2751_v3 = vrot.slane %v2743_v32, %v5519_v16  ;;  %v2739_v8 = vsel %vm5606_vm14, %v2737_v6, %v2738_v42  ;;  %vm3036_vm0 = vsmask.f32 7452 }
 0x6e9   :  { %4675 = vmatpush3.bf16.msra.mxu1 %v5515_v57  ;;  %4690 = vmatprep.mubr.bf16.mxu1 %v2610_v52  ;;  %v2742_v9 = vsel %vm5606_vm14, %v2740_v7, %v2741_v54  ;;  %v2758_v12 = vrot.slane %v2744_v36, %v5519_v16  ;;  %v4932_v57 = vld [vmem:[%s5990_s8 + $0x18] sm:$0xff]   ;;  %v2883_v19 = vcombine.high %v2881_v44, %v2881_v44  ;;  %vm3033_vm14 = vmor %vm3031_vm6, %vm3032_vm8 }
 0x6ea   :  { %4676 = vmatprep.subr.bf16.mxu1 %v4930_v1  ;;  %v2760_v55 = vcombine.low %v2739_v8, %v2742_v9  ;;  %vm3035_vm1 = vmor %vm3033_vm14, %vm3034_vm15 }
 0x6eb   :  { %v2759_v13 = vcombine.low %v2751_v3, %v2758_v12  ;;  %vm5720_vm2 = vmor %vm3035_vm1, %vm3036_vm0 }
 0x6ec   :  { %v2767_v38 = vrot.slane %v2760_v55, %v5519_v16 }
 0x6ed   :  { %4677 = vmatpush3.bf16.msra.mxu1 %v4930_v1 }
 0x6ee   :  { %4678 = vmatprep.subr.bf16.mxu1 %v4931_v11 }
 0x6f1   :  { %4679 = vmatpush3.bf16.msra.mxu1 %v4931_v11 }
 0x6f2   :  { %4680 = vmatprep.subr.bf16.mxu1 %v4932_v57 }
 0x6f5   :  { %4681 = vmatpush3.bf16.msra.mxu1 %v4932_v57 }
 0x6f6   :  { %4682 = vmatprep.subr.bf16.mxu1 %v4933_v15 }
 0x6f9   :  { %4683 = vmatpush3.bf16.msra.mxu1 %v4933_v15 }
 0x6fa   :  { %4684 = vmatprep.subr.bf16.mxu1 %v4934_v35 }
 0x6fd   :  { %4685 = vmatpush3.bf16.msra.mxu1 %v4934_v35 }
 0x6fe   :  { %4686 = vmatprep.subr.bf16.mxu1 %v4935_v17 }
 0x701   :  { %4687 = vmatpush3.bf16.msra.mxu1 %v4935_v17 }
 0x702   :  { %4688 = vmatprep.subr.bf16.mxu1 %v4936_v21 }
 0x705   :  { %4689 = vmatpush3.bf16.msra.mxu1 %v4936_v21 }
 0x706   :  { %4694 = vmatprep.subr.bf16.mxu1 %v4937_v23 }
 0x708   :  { %4691 = vmatmul.mubr.bf16.vlgmr.msra.gmra.mrb[28].mxu1 %v2618_v25 }
 0x709   :  { %4695 = vmatpush3.bf16.msra.mxu1 %v4937_v23  ;;  %4710 = vmatprep.mubr.bf16.mxu1 %v2759_v13 }
 0x70a   :  { %4696 = vmatprep.subr.bf16.mxu1 %v4938_v26 }
 0x70d   :  { %4697 = vmatpush3.bf16.msra.mxu1 %v4938_v26 }
 0x70e   :  { %4698 = vmatprep.subr.bf16.mxu1 %v4939_v40 }
 0x711   :  { %4699 = vmatpush3.bf16.msra.mxu1 %v4939_v40 }
 0x712   :  { %4700 = vmatprep.subr.bf16.mxu1 %v4940_v41 }
 0x715   :  { %4701 = vmatpush3.bf16.msra.mxu1 %v4940_v41 }
 0x716   :  { %4702 = vmatprep.subr.bf16.mxu1 %v4941_v27 }
 0x719   :  { %4703 = vmatpush3.bf16.msra.mxu1 %v4941_v27 }
 0x71a   :  { %4704 = vmatprep.subr.bf16.mxu1 %v4942_v18 }
 0x71d   :  { %4705 = vmatpush3.bf16.msra.mxu1 %v4942_v18 }
 0x71e   :  { %4706 = vmatprep.subr.bf16.mxu1 %v4943_v29 }
 0x721   :  { %4707 = vmatpush3.bf16.msra.mxu1 %v4943_v29 }
 0x722   :  { %4708 = vmatprep.subr.bf16.mxu1 %v4944_v31 }
 0x725   :  { %4709 = vmatpush3.bf16.msra.mxu1 %v4944_v31 }
 0x728   :  { %4711 = vmatmul.mubr.bf16.vlgmr.msra.gmra.mrb[28].mxu1 %v2767_v38 }
 0x7fb   :  { %v4712_v14 = vpop.f32.mrb[28].mxu1 }
 0x7fc   :  { %v2852_v28 = vpop.f32.mrb[29].mxu1  ;;  %v2874_v20 = vcombine.high %v4712_v14, %v4712_v14  ;;  %v2889_v50 = vadd.f32 %v4712_v14, %v2883_v19 }
 0x7fd   :  { %v2872_v46 = vcombine.high %v2852_v28, %v2852_v28  ;;  %v2885_v47 = vadd.f32 %v2881_v44, %v2852_v28  ;;  %v4713_v48 = vpop.f32.mrb[30].mxu1 }
 0x7fe   :  { %v2855_v49 = vpop.f32.mrb[31].mxu1  ;;  %v2890_v59 = vadd.f32 %v2881_v44, %v2874_v20  ;;  %v2895_v37 = vmax.f32 %v2889_v50, 0.0 }
 0x7ff   :  { %v2886_v51 = vadd.f32 %v2883_v19, %v2872_v46  ;;  %v2873_v52 = vcombine.high %v2855_v49, %v2855_v49  ;;  %v2887_v53 = vadd.f32 %v2881_v44, %v2855_v49  ;;  %v2891_v56 = vmax.f32 %v2885_v47, 0.0 }
 0x800   :  { %v2896_v42 = vmax.f32 %v2890_v59, 0.0 }
 0x801   :  { %v2892_v60 = vmax.f32 %v2886_v51, 0.0  ;;  %v2888_v61 = vadd.f32 %v2881_v44, %v2873_v52  ;;  %v2893_v62 = vmax.f32 %v2887_v53, 0.0 }
 0x803   :  { %v2907_v30 = vcombine.low %v2891_v56, %v2892_v60  ;;  %v2894_v63 = vmax.f32 %v2888_v61, 0.0 }
 0x805   :  { %v2908_v54 = vcombine.low %v2894_v63, %v2895_v37  ;;  %v2911_v0 = vpack.c.bf16 %v2893_v62, %v2907_v30 }
 0x807   :  { %v2912_v1 = vpack.c.bf16 %v2896_v42, %v2908_v54  ;;  %v2915_v4 = vrot.slane %v2911_v0, 7 }
 0x809   :  { %v2916_v32 = vrot.slane %v2912_v1, 7  ;;  %v2918_v5 = vsel %vm229_vm5, 0, %v2915_v4 }
 0x80a   :  { %v2922_v6 = vsel %vm398_vm9, %v2918_v5, 0 }
 0x80b   :  { %v2920_v7 = vsel %vm229_vm5, 0, %v2916_v32  ;;  %v2926_v36 = vcombine.high %v2922_v6, %v2922_v6  ;;  %v2933_v3 = vrot.slane %v2922_v6, %v5423_v10 }
 0x80c   :  { %v2923_v8 = vsel %vm398_vm9, %v2920_v7, 0 }
 0x80d   :  { %v2940_v9 = vrot.slane %v2926_v36, %v5423_v10  ;;  %v2941_v11 = vcombine.high %v2933_v3, %v2933_v3  ;;  %v5707_v12 = vrot.slane %v2933_v3, %v5423_v10  ;;  %v2974_v55 = vcombine.high %v2923_v8, %v2923_v8 }
 0x80e   :  { %v2981_v13 = vrot.slane %v2923_v8, %v5423_v10 }
 0x80f   :  { %v2942_v57 = vcombine.high %v2940_v9, %v2940_v9  ;;  %v5711_v15 = vrot.slane %v2940_v9, %v5423_v10  ;;  %v5714_v35 = vrot.slane %v2941_v11, %v5423_v10  ;;  %v5718_v17 = vcombine.high %v5707_v12, %v5707_v12 }
 0x810   :  { %v2988_v22 = vrot.slane %v2974_v55, %v5423_v10  ;;  %v2989_v23 = vcombine.high %v2981_v13, %v2981_v13  ;;  %v5726_v25 = vrot.slane %v2981_v13, %v5423_v10  ;;  %v3039_v26 = vshrl.u32 %v5707_v12, 16 }
 0x811   :  { %v5730_v40 = vrot.slane %v2942_v57, %v5423_v10  ;;  %v5734_v41 = vcombine.high %v5711_v15, %v5711_v15  ;;  %v5738_v27 = vcombine.high %v5714_v35, %v5714_v35  ;;  %v3044_v18 = vshll.u32 %v5714_v35, 16 }
 0x812   :  { %v2990_v29 = vcombine.high %v2988_v22, %v2988_v22  ;;  %v5742_v31 = vrot.slane %v2988_v22, %v5423_v10  ;;  %v5745_v38 = vrot.slane %v2989_v23, %v5423_v10  ;;  %v5749_v39 = vcombine.high %v5726_v25, %v5726_v25 }
 0x813   :  { %v5753_v44 = vcombine.high %v5730_v40, %v5730_v40  ;;  %v3046_v14 = vsel %vm5720_vm2, %v3039_v26, %v3044_v18  ;;  %v3047_v19 = vshrl.u32 %v5714_v35, 16  ;;  %v3052_v28 = vshll.u32 %v5718_v17, 16 }
 0x814   :  { %v5760_v20 = vrot.slane %v2990_v29, %v5423_v10  ;;  %v3055_v46 = vshrl.u32 %v5718_v17, 16  ;;  %v3060_v47 = vshll.u32 %v5738_v27, 16  ;;  %v3063_v48 = vshrl.u32 %v5738_v27, 16 }
 0x815   :  { %v3054_v49 = vsel %vm5720_vm2, %v3047_v19, %v3052_v28  ;;  %v3068_v50 = vshll.u32 %v5711_v15, 16  ;;  %v3071_v51 = vshrl.u32 %v5711_v15, 16  ;;  %v3076_v52 = vshll.u32 %v5730_v40, 16 }
 0x816   :  { %v3062_v53 = vsel %vm5720_vm2, %v3055_v46, %v3060_v47  ;;  %v3079_v59 = vshrl.u32 %v5730_v40, 16  ;;  %v3084_v56 = vshll.u32 %v5734_v41, 16  ;;  %v3087_v60 = vshrl.u32 %v5734_v41, 16 }
 0x817   :  { %v3070_v61 = vsel %vm5720_vm2, %v3063_v48, %v3068_v50  ;;  %v3078_v37 = vsel %vm5720_vm2, %v3071_v51, %v3076_v52  ;;  %v3092_v30 = vshll.u32 %v5753_v44, 16  ;;  %v3096_v62 = vshrl.u32 %v5726_v25, 16 }
 0x818   :  { %v3086_v63 = vsel %vm5720_vm2, %v3079_v59, %v3084_v56  ;;  %v3101_v42 = vshll.u32 %v5745_v38, 16  ;;  %v3152_v54 = vcombine.low %v3046_v14, %v3054_v49  ;;  %v3153_v0 = vcombine.low %v3062_v53, %v3070_v61 }
 0x819   :  { %v3094_v1 = vsel %vm5720_vm2, %v3087_v60, %v3092_v30  ;;  %v3154_v4 = vcombine.low %v3078_v37, %v3086_v63  ;;  %v5788_v32 = vcombine.high %v5742_v31, %v5742_v31  ;;  %v3021_v5 = vcombine.high %v5745_v38, %v5745_v38 }
 0x81a   :  { %v3103_v6 = vsel %vm5720_vm2, %v3096_v62, %v3101_v42  ;;  %v3162_v7 = vrot.slane %v3152_v54, %v5423_v10  ;;  %v3169_v36 = vrot.slane %v3153_v0, %v5423_v10  ;;  %v3023_v3 = vcombine.high %v5760_v20, %v5760_v20 }
 0x81b   :  { %v3155_v8 = vcombine.low %v3094_v1, %v3103_v6  ;;  %v3176_v9 = vrot.slane %v3154_v4, %v5423_v10  ;;  %v3104_v11 = vshrl.u32 %v5745_v38, 16  ;;  %v3109_v55 = vshll.u32 %v5749_v39, 16 }
 0x81c   :  { %v3184_v13 = vcombine.low %v3162_v7, %v3169_v36  ;;  %v3112_v57 = vshrl.u32 %v5749_v39, 16  ;;  %v3117_v22 = vshll.u32 %v3021_v5, 16  ;;  %v3120_v23 = vshrl.u32 %v3021_v5, 16 }
 0x81d   :  { %v3183_v26 = vrot.slane %v3155_v8, %v5423_v10  ;;  %v3111_v18 = vsel %vm5720_vm2, %v3104_v11, %v3109_v55  ;;  %v3125_v29 = vshll.u32 %v5742_v31, 16  ;;  %v3128_v14 = vshrl.u32 %v5742_v31, 16 }
 0x81e   :  { %v3192_v19 = vrot.slane %v3184_v13, %v5423_v10  ;;  %v3119_v28 = vsel %vm5720_vm2, %v3112_v57, %v3117_v22  ;;  %v3133_v46 = vshll.u32 %v5760_v20, 16  ;;  %v3136_v47 = vshrl.u32 %v5760_v20, 16 }
 0x81f   :  { %v3185_v48 = vcombine.low %v3176_v9, %v3183_v26  ;;  %v3127_v49 = vsel %vm5720_vm2, %v3120_v23, %v3125_v29  ;;  %v3141_v50 = vshll.u32 %v5788_v32, 16  ;;  %v3144_v51 = vshrl.u32 %v5788_v32, 16 }
 0x820   :  { %v3135_v52 = vsel %vm5720_vm2, %v3128_v14, %v3133_v46  ;;  %v3149_v53 = vshll.u32 %v3023_v3, 16  ;;  %v3201_v59 = vcombine.low %v3111_v18, %v3119_v28  ;;  %v3302_v56 = vcombine.low %v5707_v12, %v5714_v35 }
 0x821   :  { %v3199_v60 = vrot.slane %v3185_v48, %v5423_v10  ;;  %v3143_v61 = vsel %vm5720_vm2, %v3136_v47, %v3141_v50  ;;  %v3202_v37 = vcombine.low %v3127_v49, %v3135_v52  ;;  %v4343_v30 = vcombine.high %v5707_v12, %v5714_v35 }
 0x822   :  { %v3151_v62 = vsel %vm5720_vm2, %v3144_v51, %v3149_v53  ;;  %v3210_v63 = vrot.slane %v3201_v59, %v5423_v10  ;;  %v3304_v42 = vcombine.low %v5711_v15, %v5730_v40  ;;  %v3305_v54 = vcombine.low %v5734_v41, %v5726_v25 }
 0x823   :  { %v3200_v0 = vcombine.low %v3192_v19, %v3199_v60  ;;  %v3203_v1 = vcombine.low %v3143_v61, %v3151_v62  ;;  %v3217_v4 = vrot.slane %v3202_v37, %v5423_v10  ;;  %v3312_v6 = vrot.slane %v3302_v56, %v5423_v10 }
 0x824   :  { %v3319_v7 = vrot.slane %v4343_v30, %v5423_v10  ;;  %v3326_v12 = vrot.slane %v3304_v42, %v5423_v10  ;;  %v3333_v21 = vrot.slane %v3305_v54, %v5423_v10  ;;  %v3352_v8 = vcombine.low %v3021_v5, %v5742_v31 }
 0x825   :  { %4716 = vmatprep.mubr.msk.bf16.mxu0 %vm1219_vm13, %v3200_v0  ;;  %v3224_v36 = vrot.slane %v3203_v1, %v5423_v10  ;;  %v3225_v3 = vcombine.low %v3210_v63, %v3217_v4  ;;  %v3452_v55 = vcombine.low %v5714_v35, %v5718_v17  ;;  %v3351_v22 = vcombine.low %v5745_v38, %v5749_v39  ;;  %v4947_v35 = vld [vmem:[%s5991_s9 + $0x10] sm:$0xff]   ;;  %v3738_v63 = vld [vmem:[%s5992_s10 + $0x4] sm:$0xf] }
 0x826   :  { %v3334_v9 = vcombine.low %v3312_v6, %v3319_v7  ;;  %v3335_v11 = vcombine.low %v3326_v12, %v3333_v21  ;;  %v3453_v18 = vcombine.low %v5738_v27, %v5711_v15  ;;  %v3454_v5 = vcombine.low %v5730_v40, %v5734_v41 }
 0x827   :  { %v3232_v13 = vrot.slane %v3225_v3, %v5423_v10  ;;  %v3239_v57 = vrot.slane %v3224_v36, %v5423_v10  ;;  %v3367_v17 = vrot.slane %v3352_v8, %v5423_v10  ;;  %v3455_v39 = vcombine.low %v5753_v44, %v5745_v38 }
 0x828   :  { %v3342_v23 = vrot.slane %v3334_v9, %v5423_v10  ;;  %v3349_v26 = vrot.slane %v3335_v11, %v5423_v10  ;;  %v3462_v19 = vrot.slane %v3452_v55, %v5423_v10  ;;  %v3469_v28 = vrot.slane %v3453_v18, %v5423_v10 }
 0x829   :  { %v3240_v29 = vcombine.low %v3232_v13, %v3239_v57  ;;  %v3353_v15 = vcombine.low %v5760_v20, %v5788_v32  ;;  %v3360_v40 = vrot.slane %v3351_v22, %v5423_v10  ;;  %v3476_v41 = vrot.slane %v3454_v5, %v5423_v10 }
 0x82a   :  { %v3350_v14 = vcombine.low %v3342_v23, %v3349_v26  ;;  %v3483_v27 = vrot.slane %v3455_v39, %v5423_v10  ;;  %v3484_v44 = vcombine.low %v3462_v19, %v3469_v28  ;;  %v3502_v52 = vcombine.low %v5742_v31, %v5760_v20 }
 0x82b   :  { %4717 = vmatmul.mubr.msk.bf16.vlgmr.msra.gmra.mrb[32].mxu0 %vm1219_vm13, %v3240_v29  ;;  %v3375_v46 = vcombine.low %v3360_v40, %v3367_v17  ;;  %v3374_v48 = vrot.slane %v3353_v15, %v5423_v10  ;;  %v4347_v53 = vcombine.high %v5726_v25, %v5745_v38  ;;  %v4348_v60 = vcombine.high %v5742_v31, %v5760_v20  ;;  %v5895_v20 = vld [vmem:[%s5992_s10] sm:$0xf] }
 0x82c   :  { %4721 = vmatpush3.bf16.msra.mxu0 %v5694_v43  ;;  %4722 = vmatprep.mubr.msk.bf16.mxu0 %vm1219_vm13, %v3350_v14  ;;  %v3485_v47 = vcombine.low %v3476_v41, %v3483_v27  ;;  %v3492_v49 = vrot.slane %v3484_v44, %v5423_v10  ;;  %v3517_v56 = vrot.slane %v3502_v52, %v5423_v10  ;;  %v3858_v31 = vsel %vm768_vm11, %v3738_v63, 0 }
 0x82d   :  { %4726 = vmatprep.subr.bf16.mxu0 %v4947_v35  ;;  %v3382_v50 = vrot.slane %v3375_v46, %v5423_v10  ;;  %v3389_v43 = vrot.slane %v3374_v48, %v5423_v10  ;;  %v3510_v61 = vrot.slane %v4347_v53, %v5423_v10  ;;  %v3524_v30 = vrot.slane %v4348_v60, %v5423_v10 }
 0x82e   :  { %v3499_v32 = vrot.slane %v3485_v47, %v5423_v10 }
 0x82f   :  { %v3390_v59 = vcombine.low %v3382_v50, %v3389_v43  ;;  %v3525_v37 = vcombine.low %v3510_v61, %v3517_v56  ;;  %v3539_v25 = vrot.slane %v3524_v30, %v5423_v10 }
 0x830   :  { %v3500_v51 = vcombine.low %v3492_v49, %v3499_v32 }
 0x831   :  { %v3532_v62 = vrot.slane %v3525_v37, %v5423_v10  ;;  %v3686_v10 = vrot.slane %v5526_v45, %v673_v34 }
 0x833   :  { %v3540_v38 = vcombine.low %v3532_v62, %v3539_v25  ;;  %v3688_v42 = vcombine.high %v3686_v10, %v3686_v10  ;;  %v3695_v54 = vrot.slane %v3686_v10, %v5519_v16 }
 0x835   :  { %v3702_v0 = vrot.slane %v3688_v42, %v5519_v16  ;;  %v3703_v1 = vcombine.high %v3695_v54, %v3695_v54 }
 0x837   :  { %4723 = vmatmul.mubr.msk.bf16.vlgmr.msra.gmra.mrb[32].mxu0 %vm1219_vm13, %v3390_v59  ;;  %v3704_v12 = vcombine.high %v3702_v0, %v3702_v0 }
 0x838   :  { %4727 = vmatpush3.bf16.msra.mxu0 %v4947_v35  ;;  %4728 = vmatprep.mubr.msk.bf16.mxu0 %vm1219_vm13, %v3500_v51 }
 0x839   :  { %4860 = vmatprep.subr.msk.bf16.mxu0 %vm768_vm11, %v3738_v63 }
 0x843   :  { %4729 = vmatmul.mubr.msk.bf16.vlgmr.msra.gmra.mrb[32].mxu0 %vm1219_vm13, %v3540_v38 }
 0x844   :  { %4733 = vmatpush3.bf16.msra.mxu0 %v3858_v31 }
 0x845   :  { %4861 = vmatprep.subr.msk.bf16.mxu0 %vm768_vm11, %v5895_v20 }
 0x916   :  { %v4730_v4 = vpop.f32.mrb[32].mxu0 }
 0x917   :  { %v3644_v6 = vcombine.high %v4730_v4, %v4730_v4  ;;  %v3651_v7 = vrot.slane %v4730_v4, %v5519_v16  ;;  %v3587_v21 = vpop.f32.mrb[33].mxu0 }
 0x918   :  { %v3610_v36 = vcombine.high %v3587_v21, %v3587_v21  ;;  %v3617_v3 = vrot.slane %v3587_v21, %v5519_v16  ;;  %v4731_v8 = vpop.f32.mrb[34].mxu0 }
 0x919   :  { %v3658_v9 = vrot.slane %v3644_v6, %v5519_v16  ;;  %v3659_v11 = vcombine.high %v3651_v7, %v3651_v7  ;;  %v3717_v34 = vadd.f32 %v3703_v1, %v3651_v7  ;;  %v3667_v45 = vrot.slane %v4731_v8, %v5519_v16  ;;  %v3590_v55 = vpop.f32.mrb[35].mxu0 }
 0x91a   :  { %v3624_v13 = vrot.slane %v3610_v36, %v5519_v16  ;;  %v3625_v57 = vcombine.high %v3617_v3, %v3617_v3  ;;  %v3709_v22 = vadd.f32 %v3695_v54, %v3617_v3  ;;  %v3627_v5 = vcombine.high %v3590_v55, %v3590_v55 }
 0x91b   :  { %v3660_v23 = vcombine.high %v3658_v9, %v3658_v9  ;;  %v3718_v26 = vadd.f32 %v3702_v0, %v3659_v11  ;;  %v3719_v18 = vadd.f32 %v3704_v12, %v3658_v9  ;;  %v3668_v28 = vcombine.high %v3667_v45, %v3667_v45 }
 0x91c   :  { %v3626_v29 = vcombine.high %v3624_v13, %v3624_v13  ;;  %v3710_v35 = vadd.f32 %v3703_v1, %v3625_v57  ;;  %v3711_v17 = vadd.f32 %v3702_v0, %v3624_v13  ;;  %v3723_v39 = vmax.f32 %v3709_v22, 0.0 }
 0x91d   :  { %v3732_v14 = vmax.f32 %v3718_v26, 0.0  ;;  %v3733_v19 = vmax.f32 %v3719_v18, 0.0  ;;  %v3720_v15 = vadd.f32 %v3695_v54, %v3660_v23  ;;  %v3721_v44 = vadd.f32 %v3703_v1, %v3667_v45 }
 0x91e   :  { %v3712_v40 = vadd.f32 %v3704_v12, %v3626_v29  ;;  %v3724_v41 = vmax.f32 %v3710_v35, 0.0  ;;  %v3725_v27 = vmax.f32 %v3711_v17, 0.0  ;;  %v3722_v47 = vadd.f32 %v3702_v0, %v3668_v28 }
 0x91f   :  { %v3788_v46 = vcombine.low %v3732_v14, %v3733_v19  ;;  %v3734_v48 = vmax.f32 %v3720_v15, 0.0  ;;  %v3634_v49 = vrot.slane %v3590_v55, %v5519_v16  ;;  %v3735_v51 = vmax.f32 %v3721_v44, 0.0  ;;  %v3739_v15 = vld [vmem:[%s5992_s10 + $0x8] sm:$0xf] }
 0x920   :  { %v3726_v32 = vmax.f32 %v3712_v40, 0.0  ;;  %v3754_v50 = vcombine.low %v3723_v39, %v3724_v41  ;;  %v3641_v52 = vrot.slane %v3627_v5, %v5519_v16  ;;  %v3736_v43 = vmax.f32 %v3722_v47, 0.0  ;;  %v4949_v44 = vld [vmem:[%s5993_s11 + $0x8] sm:$0xff]   ;;  %v4950_v47 = vld [vmem:[%s5993_s11 + $0x10] sm:$0xff]  }
 0x921   :  { %v3642_v53 = vcombine.high %v3634_v49, %v3634_v49  ;;  %v3713_v59 = vadd.f32 %v3695_v54, %v3634_v49  ;;  %v3804_v60 = vcombine.low %v3734_v48, %v3735_v51  ;;  %v3731_v6 = vmax.f32 %v3717_v34, 0.0  ;;  %v4951_v48 = vld [vmem:[%s5993_s11 + $0x18] sm:$0xff]   ;;  %v4952_v49 = vld [vmem:[%s5993_s11 + $0x20] sm:$0xff]  }
 0x922   :  { %v3755_v56 = vcombine.low %v3725_v27, %v3726_v32  ;;  %v3643_v61 = vcombine.high %v3641_v52, %v3641_v52  ;;  %v3762_v37 = vrot.slane %v3754_v50, %v5519_v16  ;;  %v3715_v62 = vadd.f32 %v3702_v0, %v3641_v52  ;;  %v4953_v32 = vld [vmem:[%s5993_s11 + $0x28] sm:$0xff]   ;;  %v4954_v50 = vld [vmem:[%s5993_s11 + $0x30] sm:$0xff]   ;;  %v4955_v51 = vld [vmem:[%s5993_s11 + $0x38] sm:$0xff]  }
 0x923   :  { %v3714_v30 = vadd.f32 %v3703_v1, %v3642_v53  ;;  %v3811_v38 = vrot.slane %v3804_v60, %v5519_v16  ;;  %v3818_v63 = vrot.slane %v3736_v43, %v5519_v16  ;;  %v3727_v10 = vmax.f32 %v3713_v59, 0.0  ;;  %v5006_v52 = vld [vmem:[%s5994_s12 + $0x8] sm:$0xff] }
 0x924   :  { %v3769_v25 = vrot.slane %v3755_v56, %v5519_v16  ;;  %v3716_v31 = vadd.f32 %v3695_v54, %v3643_v61  ;;  %v3729_v4 = vmax.f32 %v3715_v62, 0.0  ;;  %v3802_v1 = vrot.slane %v3788_v46, %v5519_v16 }
 0x925   :  { %v3728_v42 = vmax.f32 %v3714_v30, 0.0  ;;  %v3819_v12 = vcombine.low %v3811_v38, %v3818_v63  ;;  %v3842_v39 = vrot.slane %v5031_v2, 1  ;;  %v3914_v19 = vsel %vm768_vm11, %v5895_v20, 0  ;;  %v4948_v20 = vld [vmem:[%s5993_s11] sm:$0xff]   ;;  %s5037_s11 = smov [#allocation2]  }
 0x926   :  { %v3770_v7 = vcombine.low %v3762_v37, %v3769_v25  ;;  %v3730_v21 = vmax.f32 %v3716_v31, 0.0  ;;  %v3785_v0 = vrot.slane %v3729_v4, %v5519_v16  ;;  %v3980_v40 = vsel %vm768_vm11, %v3739_v15, 0  ;;  %s4177_s12 = sshll.u32 %s5037_s11, 4  ;;  %s4178_s12 = int_to_ptr.vmem [resolvable:$true] %s4177_s12 }
 0x927   :  { %v3771_v36 = vcombine.low %v3727_v10, %v3728_v42  ;;  %v4038_v43 = vrot.slane %v5006_v52, %v951_v24  ;;  %v4068_v4 = vrot.slane %v5006_v52, %v1119_v58  ;;  %s5007_s28 = scalar_lea.vmem %s4178_s12, 512  ;;  %p5012_p1 = scmp.lt.s32.totalorder %s4178_s12, %s4178_s12 }
 0x928   :  { %v3787_v3 = vcombine.low %v3730_v21, %v3731_v6  ;;  %p5008_p0 = scmp.ne.s32.totalorder %s4178_s12, %s5007_s28  ;;  %p5013_p2 = scmp.lt.s32.totalorder %s5007_s28, %s5007_s28 }
 0x929   :  { %v3778_v8 = vrot.slane %v3771_v36, %v5519_v16 }
 0x92a   :  { %v3795_v9 = vrot.slane %v3787_v3, %v5519_v16  ;;  %p5014_p3 = por %p5013_p2, %p5012_p1 }
 0x92b   :  { %v3786_v11 = vcombine.low %v3778_v8, %v3785_v0 }
 0x92c   :  { %v3803_v45 = vcombine.low %v3795_v9, %v3802_v1  ;;  %p5015_p4 = pnand %p5014_p3, %p5008_p0 }
 0x92d   :  { %v3824_v54 = vpack.c.bf16 %v3786_v11, %v3770_v7 }
 0x92e   :  { %v3825_v55 = vpack.c.bf16 %v3819_v12, %v3803_v45 }
 0x92f   :  { %v3828_v13 = vrot.slane %v3824_v54, 7 }
 0x930   :  { %v3829_v57 = vrot.slane %v3825_v55, 7 }
 0x931   :  { %v3831_v34 = vsel %vm229_vm5, 0, %v3828_v13 }
 0x932   :  { %v3836_v22 = vshll.u32 %v3831_v34, 16  ;;  %v3833_v23 = vsel %vm229_vm5, 0, %v3829_v57  ;;  %v3834_v18 = vshrl.u32 %v3831_v34, 16  ;;  %v3968_v2 = vrot.slane %v3831_v34, 1 }
 0x933   :  { %v3846_v26 = vshll.u32 %v3833_v23, 16  ;;  %v3844_v29 = vshrl.u32 %v3833_v23, 16  ;;  %v3971_v27 = vrot.slane %v3833_v23, 1 }
 0x934   :  { %v3838_v5 = vrot.slane %v3836_v22, 1  ;;  %v3970_v41 = vsel %vm398_vm9, %v3968_v2, %v3842_v39 }
 0x935   :  { %v3848_v35 = vrot.slane %v3846_v26, 1  ;;  %v3972_v46 = vsel %vm398_vm9, %v3971_v27, %v3842_v39 }
 0x936   :  { %v3839_v17 = vor.u32 %v3838_v5, %v3834_v18 }
 0x937   :  { %v3849_v16 = vor.u32 %v3848_v35, %v3844_v29 }
 0x938   :  { %v3843_v14 = vsel %vm236_vm10, %v3839_v17, %v3842_v39 }
 0x939   :  { %4734 = vmatprep.mubr.msk.bf16.mxu0 %vm761_vm12, %v3843_v14  ;;  %v3850_v28 = vsel %vm236_vm10, %v3849_v16, %v3842_v39 }
 0x93a   :  { %4735 = vmatmul.mubr.msk.bf16.vlgmr.msra.gmra.mrb[36].mxu0 %vm761_vm12, %v3850_v28 }
 0x93b   :  { %4739 = vmatpush3.bf16.msra.mxu0 %v3914_v19  ;;  %4740 = vmatprep.mubr.msk.bf16.mxu0 %vm761_vm12, %v3831_v34 }
 0x93c   :  { %4862 = vmatprep.subr.msk.bf16.mxu0 %vm768_vm11, %v3739_v15 }
 0x946   :  { %4741 = vmatmul.mubr.msk.bf16.vlgmr.msra.gmra.mrb[36].mxu0 %vm761_vm12, %v3833_v23 }
 0x947   :  { %4745 = vmatpush3.bf16.msra.mxu0 %v3980_v40  ;;  %4746 = vmatprep.mubr.msk.bf16.mxu0 %vm761_vm12, %v3970_v41 }
 0x948   :  { %4750 = vmatprep.subr.bf16.mxu0 %v4948_v20 }
 0x952   :  { %4747 = vmatmul.mubr.msk.bf16.vlgmr.msra.gmra.mrb[36].mxu0 %vm761_vm12, %v3972_v46 }
 0x953   :  { %4751 = vmatpush3.bf16.msra.mxu0 %v4948_v20 }
 0x954   :  { %4752 = vmatprep.subr.bf16.mxu0 %v4949_v44 }
 0x957   :  { %4753 = vmatpush3.bf16.msra.mxu0 %v4949_v44 }
 0x958   :  { %4754 = vmatprep.subr.bf16.mxu0 %v4950_v47 }
 0x95b   :  { %4755 = vmatpush3.bf16.msra.mxu0 %v4950_v47 }
 0x95c   :  { %4756 = vmatprep.subr.bf16.mxu0 %v4951_v48 }
 0x95f   :  { %4757 = vmatpush3.bf16.msra.mxu0 %v4951_v48 }
 0x960   :  { %4758 = vmatprep.subr.bf16.mxu0 %v4952_v49 }
 0x963   :  { %4759 = vmatpush3.bf16.msra.mxu0 %v4952_v49 }
 0x964   :  { %4760 = vmatprep.subr.bf16.mxu0 %v4953_v32 }
 0x967   :  { %4761 = vmatpush3.bf16.msra.mxu0 %v4953_v32 }
 0x968   :  { %4762 = vmatprep.subr.bf16.mxu0 %v4954_v50 }
 0x96b   :  { %4763 = vmatpush3.bf16.msra.mxu0 %v4954_v50 }
 0x96c   :  { %4764 = vmatprep.subr.bf16.mxu0 %v4955_v51 }
 0x96f   :  { %4765 = vmatpush3.bf16.msra.mxu0 %v4955_v51 }
 0xa25   :  { %v4748_v53 = vpop.f32.mrb[36].mxu0 }
 0xa26   :  { %v4041_v59 = vadd.f32 %v4748_v53, %v4038_v43  ;;  %v4016_v56 = vpop.f32.mrb[37].mxu0 }
 0xa27   :  { %v4039_v60 = vadd.f32 %v4038_v43, %v4016_v56  ;;  %v4749_v61 = vpop.f32.mrb[38].mxu0 }
 0xa28   :  { %v4042_v37 = vadd.f32 %v4749_v61, %v4038_v43  ;;  %v4019_v30 = vpop.f32.mrb[39].mxu0  ;;  %v4045_v25 = vmax.f32 %v4041_v59, 0.0 }
 0xa29   :  { %v4040_v62 = vadd.f32 %v4038_v43, %v4019_v30  ;;  %v4043_v63 = vmax.f32 %v4039_v60, 0.0 }
 0xa2a   :  { %v4046_v38 = vmax.f32 %v4042_v37, 0.0 }
 0xa2b   :  { %v4044_v31 = vmax.f32 %v4040_v62, 0.0 }
 0xa2c   :  { %v4048_v10 = vpack.c.bf16 %v4046_v38, %v4045_v25 }
 0xa2d   :  { %v4047_v42 = vpack.c.bf16 %v4044_v31, %v4043_v63 }
 0xa2f   :  { %4766 = vmatprep.mubr.bf16.mxu0 %v4047_v42 }
 0xa30   :  { %4767 = vmatmul.mubr.bf16.vlgmr.msra.gmra.mrb[40].mxu0 %v4048_v10 }
 0xb03   :  { %v4768_v24 = vpop.f32.mrb[40].mxu0 }
 0xb04   :  { %v4160_v6 = vadd.f32 %v4768_v24, %v4068_v4  ;;  %v4151_v7 = vpop.f32.mrb[41].mxu0 }
 0xb05   :  { %v4152_v12 = vadd.f32 %v4151_v7, %v4068_v4  ;;  %v4769_v21 = vpop.f32.mrb[42].mxu0 }
 0xb06   :  { %4168 = vst [vmem:[#allocation2 + $0x10] sm:$0xff] %v4160_v6  ;;  %v4163_v36 = vadd.f32 %v4769_v21, %v4068_v4  ;;  %v4154_v3 = vpop.f32.mrb[43].mxu0 }
 0xb07   :  { %4166 = vst [vmem:[#allocation2] sm:$0xff] %v4152_v12  ;;  %v4155_v8 = vadd.f32 %v4154_v3, %v4068_v4 }
 0xb08   :  { %4169 = vst [vmem:[#allocation2 + $0x18] sm:$0xff] %v4163_v36 }
 0xb09   :  { %4167 = vst [vmem:[#allocation2 + $0x8] sm:$0xff] %v4155_v8 }
 0xb0a   :  { %5018 = shalt.err (!%p5015_p4)
}
 0xb0b   :  { %s5019_s30 = scalar_lea.hbm %s5996_s14, 512 }
 0xb0c   :  { %p5020_p5 = scmp.ne.s32.totalorder %s5996_s14, %s5019_s30  ;;  %p5023_p6 = scmp.lt.u32.totalorder %s5019_s30, %s5996_s14 }
 0xb0e   :  { %p5025_p7 = pnand %p5023_p6, %p5020_p5 }
 0xb10   :  { %5028 = shalt.err (!%p5025_p7)
}
 0xb11   :  { %s5038_s0 = smov 128   ;;  %s5039_s4 = smov 8  }
 0xb12   :  { %4183 = dma.vmem_to_hbm [thread:$0]  %s4178_s12, 512, %s5996_s14, [#allocation3], %s5038_s0, %s5038_s0, %s5039_s4  }
 0xb13   :  { %5029 = dma.done.wait [#allocation3], 512  }
 0xb14   :  { %5030 = vsyncadd [#allocation3], 4294966784 }
 0xb15   :  { %4189 = vsyncpa [#allocation3], 1 }

</bundles_post_ra>
